<compile_context>
chip_gen: v7x
topology: tpu7x:2x2x1
jax: 0.10.0
libtpu: 0.0.40
codegen_flags: <defaults>
</compile_context>

<pallas_src>
import functools
import math

import jax
import jax.numpy as jnp
from jax.experimental import pallas as pl
from jax.experimental.pallas import tpu as pltpu


# ----------------------------------------------------------------------------
# Small synthetic-BERT config (shapes consistent with the module's forward).
# ----------------------------------------------------------------------------
VOCAB_SIZE = 100
MAX_POS = 16
HIDDEN = 32
NUM_HEADS = 4
HEAD_DIM = HIDDEN // NUM_HEADS
INTERMEDIATE = 64
NUM_LAYERS = 2
N_CLASSES = 3
CLS_PAD = 128          # lane-dense padded classifier width (sliced in wrapper)
LN_EPS = 1e-12


def _gelu(x):
    # TODO(synk): PyTorch nn.GELU default is exact erf-GELU; tanh approximation
    # used for a clean Mosaic (EUP tanh) lowering.
    c = math.sqrt(2.0 / math.pi)
    return 0.5 * x * (1.0 + jnp.tanh(c * (x + 0.044715 * x * x * x)))


def _layernorm(x, g, b):
    mean = jnp.mean(x, axis=-1, keepdims=True)
    xc = x - mean
    var = jnp.mean(xc * xc, axis=-1, keepdims=True)
    return xc * jax.lax.rsqrt(var + LN_EPS) * g + b


# ----------------------------------------------------------------------------
# The single fused kernel: embed-LN + all encoder layers + pooler/classifier.
# Grid axis = layer index; activation carried in VMEM scratch h_ref.
# ----------------------------------------------------------------------------
def _bert_forward_kernel(x_emb_ref, bias_ref, eg_ref, eb_ref,
                         wqkv_ref, bqkv_ref, wo_ref, bo_ref,
                         ln1g_ref, ln1b_ref,
                         w1_ref, b1_ref, w2_ref, b2_ref,
                         ln2g_ref, ln2b_ref,
                         pw_ref, pb_ref, cw_ref, cb_ref,
                         o_ref, h_ref,
                         *, batch, seq, heads, head_dim):
    hidden = heads * head_dim
    layer = pl.program_id(0)

    # ---- embedding LayerNorm only once, before the first encoder layer ----
    @pl.when(layer == 0)
    def _embed_ln():
        h_ref[...] = _layernorm(x_emb_ref[...], eg_ref[...], eb_ref[...])

    x = h_ref[...]                                            # (B*S, H) f32

    # ---- fused QKV projection (scale already folded into Wq columns) ----
    qkv = jnp.dot(x, wqkv_ref[...],
                  preferred_element_type=jnp.float32) + bqkv_ref[...]
    kbias = bias_ref[...]                                     # (B, 1, S)

    # ---- multi-head self-attention: batch handled by batched einsums,
    #      per-head context kept entirely in registers (no scratch stores) ----
    ctx_heads = []
    for h in range(heads):
        c0 = h * head_dim
        qh = qkv[:, c0:c0 + head_dim].reshape(batch, seq, head_dim)
        kh = qkv[:, hidden + c0:hidden + c0 + head_dim].reshape(
            batch, seq, head_dim)
        vh = qkv[:, 2 * hidden + c0:2 * hidden + c0 + head_dim].reshape(
            batch, seq, head_dim)

        s = jnp.einsum("bqd,bkd->bqk", qh, kh,
                       preferred_element_type=jnp.float32) + kbias
        m = jnp.max(s, axis=-1, keepdims=True)
        p = jnp.exp(s - m)
        l = jnp.sum(p, axis=-1, keepdims=True)
        probs = p * pl.reciprocal(l, approx=True)
        ctx_heads.append(jnp.einsum("bqk,bkd->bqd", probs, vh,
                                    preferred_element_type=jnp.float32))

    ctx = jnp.concatenate(ctx_heads, axis=-1).reshape(batch * seq, hidden)

    # ---- output projection + residual + LayerNorm ----
    attn = jnp.dot(ctx, wo_ref[...],
                   preferred_element_type=jnp.float32) + bo_ref[...]
    x1 = _layernorm(x + attn, ln1g_ref[...], ln1b_ref[...])

    # ---- FFN (GELU) + residual + LayerNorm ----
    hmid = _gelu(jnp.dot(x1, w1_ref[...],
                         preferred_element_type=jnp.float32) + b1_ref[...])
    ffn = jnp.dot(hmid, w2_ref[...],
                  preferred_element_type=jnp.float32) + b2_ref[...]
    x2 = _layernorm(x1 + ffn, ln2g_ref[...], ln2b_ref[...])

    h_ref[...] = x2                                           # carry to next layer

    # ---- pooler + dropout(identity) + out_linear + softmax, fused ----
    @pl.when(layer == pl.num_programs(0) - 1)
    def _head():
        cls = jnp.concatenate(
            [x2[b * seq:b * seq + 1, :] for b in range(batch)], axis=0)
        pooled = jnp.tanh(jnp.dot(cls, pw_ref[...],
                                  preferred_element_type=jnp.float32)
                          + pb_ref[...])
        # nn.Dropout(p=0.2) is identity at inference time.
        logits = jnp.dot(pooled, cw_ref[...],
                         preferred_element_type=jnp.float32) + cb_ref[...]
        m = jnp.max(logits, axis=-1, keepdims=True)
        e = jnp.exp(logits - m)
        o_ref[...] = (e / jnp.sum(e, axis=-1, keepdims=True)).astype(o_ref.dtype)


def bert_forward_fused(params, x_emb, mask_bias3):
    """x_emb: (B*S, H) summed embeddings; mask_bias3: (B, 1, S) additive bias.

    Returns (B, CLS_PAD) padded softmax probabilities."""
    R, H = x_emb.shape
    B, _, S = mask_bias3.shape

    def res2(shape):   # resident 2-D input (same block every layer)
        return pl.BlockSpec(shape, lambda l: (0, 0))

    def res3(shape):   # resident 3-D input
        return pl.BlockSpec(shape, lambda l: (0, 0, 0))

    def stacked(shape):  # per-layer stacked weight: leading layer dim squeezed
        return pl.BlockSpec((None,) + shape,
                            lambda l, _n=len(shape): (l,) + (0,) * _n)

    kernel = functools.partial(_bert_forward_kernel, batch=B, seq=S,
                               heads=NUM_HEADS, head_dim=HEAD_DIM)

    return pl.pallas_call(
        kernel,
        out_shape=jax.ShapeDtypeStruct((B, CLS_PAD), jnp.float32),
        grid=(NUM_LAYERS,),
        in_specs=[
            res2((R, H)),                       # summed embeddings (resident)
            res3((B, 1, S)),                    # additive key-position bias
            res2((1, H)), res2((1, H)),         # embedding LayerNorm
            stacked((H, 3 * H)), stacked((1, 3 * H)),            # fused QKV
            stacked((H, H)), stacked((1, H)),                    # out proj
            stacked((1, H)), stacked((1, H)),                    # LN1
            stacked((H, INTERMEDIATE)), stacked((1, INTERMEDIATE)),  # FFN in
            stacked((INTERMEDIATE, H)), stacked((1, H)),             # FFN out
            stacked((1, H)), stacked((1, H)),                    # LN2
            res2((H, H)), res2((1, H)),                          # pooler
            res2((H, CLS_PAD)), res2((1, CLS_PAD)),              # classifier
        ],
        out_specs=res2((B, CLS_PAD)),
        scratch_shapes=[pltpu.VMEM((R, H), jnp.float32)],   # carried activation
        compiler_params=pltpu.CompilerParams(
            dimension_semantics=("arbitrary",)),
    )(x_emb, mask_bias3,
      params["emb_ln_g"], params["emb_ln_b"],
      params["wqkv"], params["bqkv"], params["wo"], params["bo"],
      params["ln1_g"], params["ln1_b"],
      params["w1"], params["b1"], params["w2"], params["b2"],
      params["ln2_g"], params["ln2_b"],
      params["pool_w"], params["pool_b"],
      params["cls_w_pad"], params["cls_b_pad"])


# ----------------------------------------------------------------------------
# Deterministic parameter initialization (per-layer weights stacked on axis 0).
# ----------------------------------------------------------------------------
def init_params(key):
    def nrm(k, shape, scale=0.02):
        return scale * jax.random.normal(k, shape, dtype=jnp.float32)

    keys = iter(jax.random.split(key, 8 + NUM_LAYERS * 8))

    p = {
        "word_emb": nrm(next(keys), (VOCAB_SIZE, HIDDEN)),
        "pos_emb": nrm(next(keys), (MAX_POS, HIDDEN)),
        "tok_emb": nrm(next(keys), (2, HIDDEN)),
        "emb_ln_g": jnp.ones((1, HIDDEN), jnp.float32),
        "emb_ln_b": jnp.zeros((1, HIDDEN), jnp.float32),
        "pool_w": nrm(next(keys), (HIDDEN, HIDDEN)),
        "pool_b": jnp.zeros((1, HIDDEN), jnp.float32),
    }

    # Classifier padded to a 128-wide lane-dense output; padded columns get
    # zero weights and a -1e9 bias so they receive exactly zero softmax mass.
    cls_w = nrm(next(keys), (HIDDEN, N_CLASSES))
    cls_b = jnp.zeros((1, N_CLASSES), jnp.float32)
    p["cls_w_pad"] = jnp.pad(cls_w, ((0, 0), (0, CLS_PAD - N_CLASSES)))
    p["cls_b_pad"] = jnp.concatenate(
        [cls_b, jnp.full((1, CLS_PAD - N_CLASSES), -1e9, jnp.float32)], axis=1)

    attn_scale = 1.0 / math.sqrt(HEAD_DIM)
    stacks = {k: [] for k in ("wqkv", "bqkv", "wo", "bo", "ln1_g", "ln1_b",
                              "w1", "b1", "w2", "b2", "ln2_g", "ln2_b")}
    for _ in range(NUM_LAYERS):
        # 1/sqrt(head_dim) folded into Wq (query bias is zero, so this is exact)
        wq = nrm(next(keys), (HIDDEN, HIDDEN)) * attn_scale
        wk = nrm(next(keys), (HIDDEN, HIDDEN))
        wv = nrm(next(keys), (HIDDEN, HIDDEN))
        stacks["wqkv"].append(jnp.concatenate([wq, wk, wv], axis=1))   # (H, 3H)
        stacks["bqkv"].append(jnp.zeros((1, 3 * HIDDEN), jnp.float32))
        stacks["wo"].append(nrm(next(keys), (HIDDEN, HIDDEN)))
        stacks["bo"].append(jnp.zeros((1, HIDDEN), jnp.float32))
        stacks["ln1_g"].append(jnp.ones((1, HIDDEN), jnp.float32))
        stacks["ln1_b"].append(jnp.zeros((1, HIDDEN), jnp.float32))
        stacks["w1"].append(nrm(next(keys), (HIDDEN, INTERMEDIATE)))
        stacks["b1"].append(jnp.zeros((1, INTERMEDIATE), jnp.float32))
        stacks["w2"].append(nrm(next(keys), (INTERMEDIATE, HIDDEN)))
        stacks["b2"].append(jnp.zeros((1, HIDDEN), jnp.float32))
        stacks["ln2_g"].append(jnp.ones((1, HIDDEN), jnp.float32))
        stacks["ln2_b"].append(jnp.zeros((1, HIDDEN), jnp.float32))

    for k, v in stacks.items():
        p[k] = jnp.stack(v, axis=0)          # (NUM_LAYERS, ...)
    return p


# ----------------------------------------------------------------------------
# Forward pass (only the tiny vocab gather stays in XLA glue).
# ----------------------------------------------------------------------------
def bert_sentiment_forward(params, input_ids, attention_mask):
    B, S = input_ids.shape

    # TODO(synk): for a real vocab size, fuse this gather into the kernel via
    # PrefetchScalarGridSpec + pl.Element row-gather instead of jnp.take.
    x = (jnp.take(params["word_emb"], input_ids, axis=0)
         + params["pos_emb"][None, :S, :]
         + params["tok_emb"][0][None, None, :])      # token_type_ids == 0
    x2d = x.reshape(B * S, HIDDEN)

    # HF-style additive attention-mask bias over key positions, pre-shaped
    # (B, 1, S) so it broadcasts against (B, S_q, S_k) inside the kernel.
    mask_bias = ((1.0 - attention_mask.astype(jnp.float32)) * -1e4)[:, None, :]

    probs_pad = bert_forward_fused(params, x2d, mask_bias)
    return probs_pad[:, :N_CLASSES]


if __name__ == "__main__":
    key = jax.random.PRNGKey(0)
    pkey, ikey = jax.random.split(key)
    params = init_params(pkey)

    B, S = 2, 8
    input_ids = jax.random.randint(ikey, (B, S), 0, VOCAB_SIZE, dtype=jnp.int32)
    attention_mask = jnp.array(
        [[1, 1, 1, 1, 1, 1, 1, 1],
         [1, 1, 1, 1, 1, 0, 0, 0]], dtype=jnp.int32)

    fwd = jax.jit(bert_sentiment_forward)
    probs = jax.block_until_ready(fwd(params, input_ids, attention_mask))

    assert probs.shape == (B, N_CLASSES)
    assert bool(jnp.all(jnp.isfinite(probs)))
    # final classifier softmax uses an exact divide -> tight tolerance
    assert jnp.allclose(jnp.sum(probs, axis=1), 1.0, atol=1e-3)
    print("KERNEL_OK")
</pallas_src>

<mosaic_0001>
module attributes {stable_mosaic.version = 11 : i64} {
  func.func @_bert_forward_kernel(%arg0: i32, %arg1: memref<16x32xf32, #tpu.memory_space<vmem>>, %arg2: memref<2x1x8xf32, #tpu.memory_space<vmem>>, %arg3: memref<1x32xf32, #tpu.memory_space<vmem>>, %arg4: memref<1x32xf32, #tpu.memory_space<vmem>>, %arg5: memref<1x32x96xf32, #tpu.memory_space<vmem>>, %arg6: memref<1x1x96xf32, #tpu.memory_space<vmem>>, %arg7: memref<1x32x32xf32, #tpu.memory_space<vmem>>, %arg8: memref<1x1x32xf32, #tpu.memory_space<vmem>>, %arg9: memref<1x1x32xf32, #tpu.memory_space<vmem>>, %arg10: memref<1x1x32xf32, #tpu.memory_space<vmem>>, %arg11: memref<1x32x64xf32, #tpu.memory_space<vmem>>, %arg12: memref<1x1x64xf32, #tpu.memory_space<vmem>>, %arg13: memref<1x64x32xf32, #tpu.memory_space<vmem>>, %arg14: memref<1x1x32xf32, #tpu.memory_space<vmem>>, %arg15: memref<1x1x32xf32, #tpu.memory_space<vmem>>, %arg16: memref<1x1x32xf32, #tpu.memory_space<vmem>>, %arg17: memref<32x32xf32, #tpu.memory_space<vmem>>, %arg18: memref<1x32xf32, #tpu.memory_space<vmem>>, %arg19: memref<32x128xf32, #tpu.memory_space<vmem>>, %arg20: memref<1x128xf32, #tpu.memory_space<vmem>>, %arg21: memref<2x128xf32, #tpu.memory_space<vmem>>, %arg22: memref<16x32xf32, #tpu.memory_space<vmem>>) attributes {dimension_semantics = [#tpu.dimension_semantics<arbitrary>], iteration_bounds = array<i64: 2>, scalar_prefetch = 0 : i64, scratch_operands = 1 : i64, tpu.core_type = #tpu.core_type<tc>, window_params = [{pipeline_mode = #tpu.pipeline_mode<synchronous>, transform_indices = @transform_0, window_bounds = array<i64: 16, 32>}, {pipeline_mode = #tpu.pipeline_mode<synchronous>, transform_indices = @transform_1, window_bounds = array<i64: 2, 1, 8>}, {pipeline_mode = #tpu.pipeline_mode<synchronous>, transform_indices = @transform_2, window_bounds = array<i64: 1, 32>}, {pipeline_mode = #tpu.pipeline_mode<synchronous>, transform_indices = @transform_3, window_bounds = array<i64: 1, 32>}, {transform_indices = @transform_4, window_bounds = array<i64: 1, 32, 96>}, {transform_indices = @transform_5, window_bounds = array<i64: 1, 1, 96>}, {transform_indices = @transform_6, window_bounds = array<i64: 1, 32, 32>}, {transform_indices = @transform_7, window_bounds = array<i64: 1, 1, 32>}, {transform_indices = @transform_8, window_bounds = array<i64: 1, 1, 32>}, {transform_indices = @transform_9, window_bounds = array<i64: 1, 1, 32>}, {transform_indices = @transform_10, window_bounds = array<i64: 1, 32, 64>}, {transform_indices = @transform_11, window_bounds = array<i64: 1, 1, 64>}, {transform_indices = @transform_12, window_bounds = array<i64: 1, 64, 32>}, {transform_indices = @transform_13, window_bounds = array<i64: 1, 1, 32>}, {transform_indices = @transform_14, window_bounds = array<i64: 1, 1, 32>}, {transform_indices = @transform_15, window_bounds = array<i64: 1, 1, 32>}, {pipeline_mode = #tpu.pipeline_mode<synchronous>, transform_indices = @transform_16, window_bounds = array<i64: 32, 32>}, {pipeline_mode = #tpu.pipeline_mode<synchronous>, transform_indices = @transform_17, window_bounds = array<i64: 1, 32>}, {pipeline_mode = #tpu.pipeline_mode<synchronous>, transform_indices = @transform_18, window_bounds = array<i64: 32, 128>}, {pipeline_mode = #tpu.pipeline_mode<synchronous>, transform_indices = @transform_19, window_bounds = array<i64: 1, 128>}, {pipeline_mode = #tpu.pipeline_mode<synchronous>, transform_indices = @transform_20, window_bounds = array<i64: 2, 128>}]} {
    %c0_i32 = arith.constant 0 : i32
    %0 = arith.cmpi eq, %arg0, %c0_i32 : i32
    %1 = arith.extui %0 : i1 to i32
    %c0_i32_0 = arith.constant 0 : i32
    %2 = arith.cmpi ne, %1, %c0_i32_0 : i32
    scf.if %2 {
      %c0_77 = arith.constant 0 : index
      %c0_78 = arith.constant 0 : index
      %182 = vector.load %arg1[%c0_77, %c0_78] : memref<16x32xf32, #tpu.memory_space<vmem>>, vector<16x32xf32>
      %c0_79 = arith.constant 0 : index
      %c0_80 = arith.constant 0 : index
      %183 = vector.load %arg3[%c0_79, %c0_80] : memref<1x32xf32, #tpu.memory_space<vmem>>, vector<1x32xf32>
      %c0_81 = arith.constant 0 : index
      %c0_82 = arith.constant 0 : index
      %184 = vector.load %arg4[%c0_81, %c0_82] : memref<1x32xf32, #tpu.memory_space<vmem>>, vector<1x32xf32>
      %cst_83 = arith.constant dense<0.000000e+00> : vector<16xf32>
      %185 = vector.multi_reduction <add>, %182, %cst_83 [1] : vector<16x32xf32> to vector<16xf32>
      %186 = vector.shape_cast %185 : vector<16xf32> to vector<16x1xf32>
      %cst_84 = arith.constant 3.200000e+01 : f32
      %187 = vector.broadcast %cst_84 : f32 to vector<16x1xf32>
      %188 = arith.divf %186, %187 : vector<16x1xf32>
      %189 = vector.broadcast %188 : vector<16x1xf32> to vector<16x32xf32>
      %190 = arith.subf %182, %189 : vector<16x32xf32>
      %191 = arith.mulf %190, %190 : vector<16x32xf32>
      %cst_85 = arith.constant dense<0.000000e+00> : vector<16xf32>
      %192 = vector.multi_reduction <add>, %191, %cst_85 [1] : vector<16x32xf32> to vector<16xf32>
      %193 = vector.shape_cast %192 : vector<16xf32> to vector<16x1xf32>
      %cst_86 = arith.constant 3.200000e+01 : f32
      %194 = vector.broadcast %cst_86 : f32 to vector<16x1xf32>
      %195 = arith.divf %193, %194 : vector<16x1xf32>
      %cst_87 = arith.constant 9.99999996E-13 : f32
      %196 = vector.broadcast %cst_87 : f32 to vector<16x1xf32>
      %197 = arith.addf %195, %196 : vector<16x1xf32>
      %198 = math.rsqrt %197 : vector<16x1xf32>
      %199 = vector.broadcast %198 : vector<16x1xf32> to vector<16x32xf32>
      %200 = arith.mulf %190, %199 : vector<16x32xf32>
      %201 = vector.broadcast %183 : vector<1x32xf32> to vector<16x32xf32>
      %202 = arith.mulf %200, %201 : vector<16x32xf32>
      %203 = vector.broadcast %184 : vector<1x32xf32> to vector<16x32xf32>
      %204 = arith.addf %202, %203 : vector<16x32xf32>
      %c0_88 = arith.constant 0 : index
      %c0_89 = arith.constant 0 : index
      %205 = vector.load %arg22[%c0_88, %c0_89] : memref<16x32xf32, #tpu.memory_space<vmem>>, vector<16x32xf32>
      tpu.vector_store %arg22[%c0_88, %c0_89], %204 {strides = array<i32>} : memref<16x32xf32, #tpu.memory_space<vmem>>, vector<16x32xf32>,
    } else {
    }
    %c0 = arith.constant 0 : index
    %c0_1 = arith.constant 0 : index
    %3 = vector.load %arg22[%c0, %c0_1] : memref<16x32xf32, #tpu.memory_space<vmem>>, vector<16x32xf32>
    %c0_2 = arith.constant 0 : index
    %c0_3 = arith.constant 0 : index
    %c0_4 = arith.constant 0 : index
    %4 = vector.load %arg5[%c0_2, %c0_3, %c0_4] : memref<1x32x96xf32, #tpu.memory_space<vmem>>, vector<1x32x96xf32>
    %5 = vector.shape_cast %4 : vector<1x32x96xf32> to vector<32x96xf32>
    %cst = arith.constant dense<0.000000e+00> : vector<16x96xf32>
    %6 = tpu.matmul %3, %5, %cst {dimension_numbers = #tpu.dot_dimension_numbers<[1], [0], [0], [1], [0, 0, 1, 1], [], []>} : vector<16x32xf32>, vector<32x96xf32>, vector<16x96xf32> -> vector<16x96xf32>
    %c0_5 = arith.constant 0 : index
    %c0_6 = arith.constant 0 : index
    %c0_7 = arith.constant 0 : index
    %7 = vector.load %arg6[%c0_5, %c0_6, %c0_7] : memref<1x1x96xf32, #tpu.memory_space<vmem>>, vector<1x1x96xf32>
    %8 = vector.shape_cast %7 : vector<1x1x96xf32> to vector<1x96xf32>
    %9 = vector.broadcast %8 : vector<1x96xf32> to vector<16x96xf32>
    %10 = arith.addf %6, %9 : vector<16x96xf32>
    %c0_8 = arith.constant 0 : index
    %c0_9 = arith.constant 0 : index
    %c0_10 = arith.constant 0 : index
    %11 = vector.load %arg2[%c0_8, %c0_9, %c0_10] : memref<2x1x8xf32, #tpu.memory_space<vmem>>, vector<2x1x8xf32>
    %12 = vector.extract_strided_slice %10 {offsets = [0, 0], sizes = [16, 8], strides = [1, 1]} : vector<16x96xf32> to vector<16x8xf32>
    %13 = vector.shape_cast %12 : vector<16x8xf32> to vector<2x8x8xf32>
    %14 = vector.extract_strided_slice %10 {offsets = [0, 32], sizes = [16, 8], strides = [1, 1]} : vector<16x96xf32> to vector<16x8xf32>
    %15 = vector.shape_cast %14 : vector<16x8xf32> to vector<2x8x8xf32>
    %16 = vector.extract_strided_slice %10 {offsets = [0, 64], sizes = [16, 8], strides = [1, 1]} : vector<16x96xf32> to vector<16x8xf32>
    %17 = vector.shape_cast %16 : vector<16x8xf32> to vector<2x8x8xf32>
    "tpu.trace_start"() <{level = 10 : i32, message = "bqd,bkd->bqk"}> : () -> ()
    %cst_11 = arith.constant dense<0.000000e+00> : vector<2x8x8xf32>
    %18 = tpu.matmul %13, %15, %cst_11 {dimension_numbers = #tpu.dot_dimension_numbers<[2], [2], [1], [1], [0, 0, 0, 1, 1, 1], [0], [0]>} : vector<2x8x8xf32>, vector<2x8x8xf32>, vector<2x8x8xf32> -> vector<2x8x8xf32>
    "tpu.trace_stop"() : () -> ()
    %19 = vector.broadcast %11 : vector<2x1x8xf32> to vector<2x8x8xf32>
    %20 = arith.addf %18, %19 : vector<2x8x8xf32>
    %cst_12 = arith.constant dense<0xFF800000> : vector<2x8xf32>
    %21 = vector.multi_reduction <maximumf>, %20, %cst_12 [2] : vector<2x8x8xf32> to vector<2x8xf32>
    %22 = vector.shape_cast %21 : vector<2x8xf32> to vector<2x8x1xf32>
    %23 = vector.broadcast %22 : vector<2x8x1xf32> to vector<2x8x8xf32>
    %24 = arith.subf %20, %23 : vector<2x8x8xf32>
    %25 = math.exp %24 : vector<2x8x8xf32>
    %cst_13 = arith.constant dense<0.000000e+00> : vector<2x8xf32>
    %26 = vector.multi_reduction <add>, %25, %cst_13 [2] : vector<2x8x8xf32> to vector<2x8xf32>
    %27 = vector.shape_cast %26 : vector<2x8xf32> to vector<2x8x1xf32>
    %28 = tpu.reciprocal %27 {approx = true} : vector<2x8x1xf32> -> vector<2x8x1xf32>
    %29 = vector.broadcast %28 : vector<2x8x1xf32> to vector<2x8x8xf32>
    %30 = arith.mulf %25, %29 : vector<2x8x8xf32>
    "tpu.trace_start"() <{level = 10 : i32, message = "bqk,bkd->bqd"}> : () -> ()
    %cst_14 = arith.constant dense<0.000000e+00> : vector<2x8x8xf32>
    %31 = tpu.matmul %30, %17, %cst_14 {dimension_numbers = #tpu.dot_dimension_numbers<[2], [1], [1], [2], [0, 0, 0, 1, 1, 2], [0], [0]>} : vector<2x8x8xf32>, vector<2x8x8xf32>, vector<2x8x8xf32> -> vector<2x8x8xf32>
    "tpu.trace_stop"() : () -> ()
    %32 = vector.extract_strided_slice %10 {offsets = [0, 8], sizes = [16, 8], strides = [1, 1]} : vector<16x96xf32> to vector<16x8xf32>
    %33 = vector.shape_cast %32 : vector<16x8xf32> to vector<2x8x8xf32>
    %34 = vector.extract_strided_slice %10 {offsets = [0, 40], sizes = [16, 8], strides = [1, 1]} : vector<16x96xf32> to vector<16x8xf32>
    %35 = vector.shape_cast %34 : vector<16x8xf32> to vector<2x8x8xf32>
    %36 = vector.extract_strided_slice %10 {offsets = [0, 72], sizes = [16, 8], strides = [1, 1]} : vector<16x96xf32> to vector<16x8xf32>
    %37 = vector.shape_cast %36 : vector<16x8xf32> to vector<2x8x8xf32>
    "tpu.trace_start"() <{level = 10 : i32, message = "bqd,bkd->bqk"}> : () -> ()
    %cst_15 = arith.constant dense<0.000000e+00> : vector<2x8x8xf32>
    %38 = tpu.matmul %33, %35, %cst_15 {dimension_numbers = #tpu.dot_dimension_numbers<[2], [2], [1], [1], [0, 0, 0, 1, 1, 1], [0], [0]>} : vector<2x8x8xf32>, vector<2x8x8xf32>, vector<2x8x8xf32> -> vector<2x8x8xf32>
    "tpu.trace_stop"() : () -> ()
    %39 = vector.broadcast %11 : vector<2x1x8xf32> to vector<2x8x8xf32>
    %40 = arith.addf %38, %39 : vector<2x8x8xf32>
    %cst_16 = arith.constant dense<0xFF800000> : vector<2x8xf32>
    %41 = vector.multi_reduction <maximumf>, %40, %cst_16 [2] : vector<2x8x8xf32> to vector<2x8xf32>
    %42 = vector.shape_cast %41 : vector<2x8xf32> to vector<2x8x1xf32>
    %43 = vector.broadcast %42 : vector<2x8x1xf32> to vector<2x8x8xf32>
    %44 = arith.subf %40, %43 : vector<2x8x8xf32>
    %45 = math.exp %44 : vector<2x8x8xf32>
    %cst_17 = arith.constant dense<0.000000e+00> : vector<2x8xf32>
    %46 = vector.multi_reduction <add>, %45, %cst_17 [2] : vector<2x8x8xf32> to vector<2x8xf32>
    %47 = vector.shape_cast %46 : vector<2x8xf32> to vector<2x8x1xf32>
    %48 = tpu.reciprocal %47 {approx = true} : vector<2x8x1xf32> -> vector<2x8x1xf32>
    %49 = vector.broadcast %48 : vector<2x8x1xf32> to vector<2x8x8xf32>
    %50 = arith.mulf %45, %49 : vector<2x8x8xf32>
    "tpu.trace_start"() <{level = 10 : i32, message = "bqk,bkd->bqd"}> : () -> ()
    %cst_18 = arith.constant dense<0.000000e+00> : vector<2x8x8xf32>
    %51 = tpu.matmul %50, %37, %cst_18 {dimension_numbers = #tpu.dot_dimension_numbers<[2], [1], [1], [2], [0, 0, 0, 1, 1, 2], [0], [0]>} : vector<2x8x8xf32>, vector<2x8x8xf32>, vector<2x8x8xf32> -> vector<2x8x8xf32>
    "tpu.trace_stop"() : () -> ()
    %52 = vector.extract_strided_slice %10 {offsets = [0, 16], sizes = [16, 8], strides = [1, 1]} : vector<16x96xf32> to vector<16x8xf32>
    %53 = vector.shape_cast %52 : vector<16x8xf32> to vector<2x8x8xf32>
    %54 = vector.extract_strided_slice %10 {offsets = [0, 48], sizes = [16, 8], strides = [1, 1]} : vector<16x96xf32> to vector<16x8xf32>
    %55 = vector.shape_cast %54 : vector<16x8xf32> to vector<2x8x8xf32>
    %56 = vector.extract_strided_slice %10 {offsets = [0, 80], sizes = [16, 8], strides = [1, 1]} : vector<16x96xf32> to vector<16x8xf32>
    %57 = vector.shape_cast %56 : vector<16x8xf32> to vector<2x8x8xf32>
    "tpu.trace_start"() <{level = 10 : i32, message = "bqd,bkd->bqk"}> : () -> ()
    %cst_19 = arith.constant dense<0.000000e+00> : vector<2x8x8xf32>
    %58 = tpu.matmul %53, %55, %cst_19 {dimension_numbers = #tpu.dot_dimension_numbers<[2], [2], [1], [1], [0, 0, 0, 1, 1, 1], [0], [0]>} : vector<2x8x8xf32>, vector<2x8x8xf32>, vector<2x8x8xf32> -> vector<2x8x8xf32>
    "tpu.trace_stop"() : () -> ()
    %59 = vector.broadcast %11 : vector<2x1x8xf32> to vector<2x8x8xf32>
    %60 = arith.addf %58, %59 : vector<2x8x8xf32>
    %cst_20 = arith.constant dense<0xFF800000> : vector<2x8xf32>
    %61 = vector.multi_reduction <maximumf>, %60, %cst_20 [2] : vector<2x8x8xf32> to vector<2x8xf32>
    %62 = vector.shape_cast %61 : vector<2x8xf32> to vector<2x8x1xf32>
    %63 = vector.broadcast %62 : vector<2x8x1xf32> to vector<2x8x8xf32>
    %64 = arith.subf %60, %63 : vector<2x8x8xf32>
    %65 = math.exp %64 : vector<2x8x8xf32>
    %cst_21 = arith.constant dense<0.000000e+00> : vector<2x8xf32>
    %66 = vector.multi_reduction <add>, %65, %cst_21 [2] : vector<2x8x8xf32> to vector<2x8xf32>
    %67 = vector.shape_cast %66 : vector<2x8xf32> to vector<2x8x1xf32>
    %68 = tpu.reciprocal %67 {approx = true} : vector<2x8x1xf32> -> vector<2x8x1xf32>
    %69 = vector.broadcast %68 : vector<2x8x1xf32> to vector<2x8x8xf32>
    %70 = arith.mulf %65, %69 : vector<2x8x8xf32>
    "tpu.trace_start"() <{level = 10 : i32, message = "bqk,bkd->bqd"}> : () -> ()
    %cst_22 = arith.constant dense<0.000000e+00> : vector<2x8x8xf32>
    %71 = tpu.matmul %70, %57, %cst_22 {dimension_numbers = #tpu.dot_dimension_numbers<[2], [1], [1], [2], [0, 0, 0, 1, 1, 2], [0], [0]>} : vector<2x8x8xf32>, vector<2x8x8xf32>, vector<2x8x8xf32> -> vector<2x8x8xf32>
    "tpu.trace_stop"() : () -> ()
    %72 = vector.extract_strided_slice %10 {offsets = [0, 24], sizes = [16, 8], strides = [1, 1]} : vector<16x96xf32> to vector<16x8xf32>
    %73 = vector.shape_cast %72 : vector<16x8xf32> to vector<2x8x8xf32>
    %74 = vector.extract_strided_slice %10 {offsets = [0, 56], sizes = [16, 8], strides = [1, 1]} : vector<16x96xf32> to vector<16x8xf32>
    %75 = vector.shape_cast %74 : vector<16x8xf32> to vector<2x8x8xf32>
    %76 = vector.extract_strided_slice %10 {offsets = [0, 88], sizes = [16, 8], strides = [1, 1]} : vector<16x96xf32> to vector<16x8xf32>
    %77 = vector.shape_cast %76 : vector<16x8xf32> to vector<2x8x8xf32>
    "tpu.trace_start"() <{level = 10 : i32, message = "bqd,bkd->bqk"}> : () -> ()
    %cst_23 = arith.constant dense<0.000000e+00> : vector<2x8x8xf32>
    %78 = tpu.matmul %73, %75, %cst_23 {dimension_numbers = #tpu.dot_dimension_numbers<[2], [2], [1], [1], [0, 0, 0, 1, 1, 1], [0], [0]>} : vector<2x8x8xf32>, vector<2x8x8xf32>, vector<2x8x8xf32> -> vector<2x8x8xf32>
    "tpu.trace_stop"() : () -> ()
    %79 = vector.broadcast %11 : vector<2x1x8xf32> to vector<2x8x8xf32>
    %80 = arith.addf %78, %79 : vector<2x8x8xf32>
    %cst_24 = arith.constant dense<0xFF800000> : vector<2x8xf32>
    %81 = vector.multi_reduction <maximumf>, %80, %cst_24 [2] : vector<2x8x8xf32> to vector<2x8xf32>
    %82 = vector.shape_cast %81 : vector<2x8xf32> to vector<2x8x1xf32>
    %83 = vector.broadcast %82 : vector<2x8x1xf32> to vector<2x8x8xf32>
    %84 = arith.subf %80, %83 : vector<2x8x8xf32>
    %85 = math.exp %84 : vector<2x8x8xf32>
    %cst_25 = arith.constant dense<0.000000e+00> : vector<2x8xf32>
    %86 = vector.multi_reduction <add>, %85, %cst_25 [2] : vector<2x8x8xf32> to vector<2x8xf32>
    %87 = vector.shape_cast %86 : vector<2x8xf32> to vector<2x8x1xf32>
    %88 = tpu.reciprocal %87 {approx = true} : vector<2x8x1xf32> -> vector<2x8x1xf32>
    %89 = vector.broadcast %88 : vector<2x8x1xf32> to vector<2x8x8xf32>
    %90 = arith.mulf %85, %89 : vector<2x8x8xf32>
    "tpu.trace_start"() <{level = 10 : i32, message = "bqk,bkd->bqd"}> : () -> ()
    %cst_26 = arith.constant dense<0.000000e+00> : vector<2x8x8xf32>
    %91 = tpu.matmul %90, %77, %cst_26 {dimension_numbers = #tpu.dot_dimension_numbers<[2], [1], [1], [2], [0, 0, 0, 1, 1, 2], [0], [0]>} : vector<2x8x8xf32>, vector<2x8x8xf32>, vector<2x8x8xf32> -> vector<2x8x8xf32>
    "tpu.trace_stop"() : () -> ()
    %92 = tpu.concatenate %31, %51, %71, %91 in 2 : vector<2x8x8xf32>, vector<2x8x8xf32>, vector<2x8x8xf32>, vector<2x8x8xf32> -> vector<2x8x32xf32>
    %93 = vector.shape_cast %92 : vector<2x8x32xf32> to vector<16x32xf32>
    %c0_27 = arith.constant 0 : index
    %c0_28 = arith.constant 0 : index
    %c0_29 = arith.constant 0 : index
    %94 = vector.load %arg7[%c0_27, %c0_28, %c0_29] : memref<1x32x32xf32, #tpu.memory_space<vmem>>, vector<1x32x32xf32>
    %95 = vector.shape_cast %94 : vector<1x32x32xf32> to vector<32x32xf32>
    %cst_30 = arith.constant dense<0.000000e+00> : vector<16x32xf32>
    %96 = tpu.matmul %93, %95, %cst_30 {dimension_numbers = #tpu.dot_dimension_numbers<[1], [0], [0], [1], [0, 0, 1, 1], [], []>} : vector<16x32xf32>, vector<32x32xf32>, vector<16x32xf32> -> vector<16x32xf32>
    %c0_31 = arith.constant 0 : index
    %c0_32 = arith.constant 0 : index
    %c0_33 = arith.constant 0 : index
    %97 = vector.load %arg8[%c0_31, %c0_32, %c0_33] : memref<1x1x32xf32, #tpu.memory_space<vmem>>, vector<1x1x32xf32>
    %98 = vector.shape_cast %97 : vector<1x1x32xf32> to vector<1x32xf32>
    %99 = vector.broadcast %98 : vector<1x32xf32> to vector<16x32xf32>
    %100 = arith.addf %96, %99 : vector<16x32xf32>
    %101 = arith.addf %3, %100 : vector<16x32xf32>
    %c0_34 = arith.constant 0 : index
    %c0_35 = arith.constant 0 : index
    %c0_36 = arith.constant 0 : index
    %102 = vector.load %arg9[%c0_34, %c0_35, %c0_36] : memref<1x1x32xf32, #tpu.memory_space<vmem>>, vector<1x1x32xf32>
    %103 = vector.shape_cast %102 : vector<1x1x32xf32> to vector<1x32xf32>
    %c0_37 = arith.constant 0 : index
    %c0_38 = arith.constant 0 : index
    %c0_39 = arith.constant 0 : index
    %104 = vector.load %arg10[%c0_37, %c0_38, %c0_39] : memref<1x1x32xf32, #tpu.memory_space<vmem>>, vector<1x1x32xf32>
    %105 = vector.shape_cast %104 : vector<1x1x32xf32> to vector<1x32xf32>
    %cst_40 = arith.constant dense<0.000000e+00> : vector<16xf32>
    %106 = vector.multi_reduction <add>, %101, %cst_40 [1] : vector<16x32xf32> to vector<16xf32>
    %107 = vector.shape_cast %106 : vector<16xf32> to vector<16x1xf32>
    %cst_41 = arith.constant 3.200000e+01 : f32
    %108 = vector.broadcast %cst_41 : f32 to vector<16x1xf32>
    %109 = arith.divf %107, %108 : vector<16x1xf32>
    %110 = vector.broadcast %109 : vector<16x1xf32> to vector<16x32xf32>
    %111 = arith.subf %101, %110 : vector<16x32xf32>
    %112 = arith.mulf %111, %111 : vector<16x32xf32>
    %cst_42 = arith.constant dense<0.000000e+00> : vector<16xf32>
    %113 = vector.multi_reduction <add>, %112, %cst_42 [1] : vector<16x32xf32> to vector<16xf32>
    %114 = vector.shape_cast %113 : vector<16xf32> to vector<16x1xf32>
    %cst_43 = arith.constant 3.200000e+01 : f32
    %115 = vector.broadcast %cst_43 : f32 to vector<16x1xf32>
    %116 = arith.divf %114, %115 : vector<16x1xf32>
    %cst_44 = arith.constant 9.99999996E-13 : f32
    %117 = vector.broadcast %cst_44 : f32 to vector<16x1xf32>
    %118 = arith.addf %116, %117 : vector<16x1xf32>
    %119 = math.rsqrt %118 : vector<16x1xf32>
    %120 = vector.broadcast %119 : vector<16x1xf32> to vector<16x32xf32>
    %121 = arith.mulf %111, %120 : vector<16x32xf32>
    %122 = vector.broadcast %103 : vector<1x32xf32> to vector<16x32xf32>
    %123 = arith.mulf %121, %122 : vector<16x32xf32>
    %124 = vector.broadcast %105 : vector<1x32xf32> to vector<16x32xf32>
    %125 = arith.addf %123, %124 : vector<16x32xf32>
    %c0_45 = arith.constant 0 : index
    %c0_46 = arith.constant 0 : index
    %c0_47 = arith.constant 0 : index
    %126 = vector.load %arg11[%c0_45, %c0_46, %c0_47] : memref<1x32x64xf32, #tpu.memory_space<vmem>>, vector<1x32x64xf32>
    %127 = vector.shape_cast %126 : vector<1x32x64xf32> to vector<32x64xf32>
    %cst_48 = arith.constant dense<0.000000e+00> : vector<16x64xf32>
    %128 = tpu.matmul %125, %127, %cst_48 {dimension_numbers = #tpu.dot_dimension_numbers<[1], [0], [0], [1], [0, 0, 1, 1], [], []>} : vector<16x32xf32>, vector<32x64xf32>, vector<16x64xf32> -> vector<16x64xf32>
    %c0_49 = arith.constant 0 : index
    %c0_50 = arith.constant 0 : index
    %c0_51 = arith.constant 0 : index
    %129 = vector.load %arg12[%c0_49, %c0_50, %c0_51] : memref<1x1x64xf32, #tpu.memory_space<vmem>>, vector<1x1x64xf32>
    %130 = vector.shape_cast %129 : vector<1x1x64xf32> to vector<1x64xf32>
    %131 = vector.broadcast %130 : vector<1x64xf32> to vector<16x64xf32>
    %132 = arith.addf %128, %131 : vector<16x64xf32>
    %cst_52 = arith.constant 5.000000e-01 : f32
    %133 = vector.broadcast %cst_52 : f32 to vector<16x64xf32>
    %134 = arith.mulf %133, %132 : vector<16x64xf32>
    %cst_53 = arith.constant 4.471500e-02 : f32
    %135 = vector.broadcast %cst_53 : f32 to vector<16x64xf32>
    %136 = arith.mulf %135, %132 : vector<16x64xf32>
    %137 = arith.mulf %136, %132 : vector<16x64xf32>
    %138 = arith.mulf %137, %132 : vector<16x64xf32>
    %139 = arith.addf %132, %138 : vector<16x64xf32>
    %cst_54 = arith.constant 0.797884583 : f32
    %140 = vector.broadcast %cst_54 : f32 to vector<16x64xf32>
    %141 = arith.mulf %140, %139 : vector<16x64xf32>
    %142 = math.tanh %141 : vector<16x64xf32>
    %cst_55 = arith.constant 1.000000e+00 : f32
    %143 = vector.broadcast %cst_55 : f32 to vector<16x64xf32>
    %144 = arith.addf %143, %142 : vector<16x64xf32>
    %145 = arith.mulf %134, %144 : vector<16x64xf32>
    %c0_56 = arith.constant 0 : index
    %c0_57 = arith.constant 0 : index
    %c0_58 = arith.constant 0 : index
    %146 = vector.load %arg13[%c0_56, %c0_57, %c0_58] : memref<1x64x32xf32, #tpu.memory_space<vmem>>, vector<1x64x32xf32>
    %147 = vector.shape_cast %146 : vector<1x64x32xf32> to vector<64x32xf32>
    %cst_59 = arith.constant dense<0.000000e+00> : vector<16x32xf32>
    %148 = tpu.matmul %145, %147, %cst_59 {dimension_numbers = #tpu.dot_dimension_numbers<[1], [0], [0], [1], [0, 0, 1, 1], [], []>} : vector<16x64xf32>, vector<64x32xf32>, vector<16x32xf32> -> vector<16x32xf32>
    %c0_60 = arith.constant 0 : index
    %c0_61 = arith.constant 0 : index
    %c0_62 = arith.constant 0 : index
    %149 = vector.load %arg14[%c0_60, %c0_61, %c0_62] : memref<1x1x32xf32, #tpu.memory_space<vmem>>, vector<1x1x32xf32>
    %150 = vector.shape_cast %149 : vector<1x1x32xf32> to vector<1x32xf32>
    %151 = vector.broadcast %150 : vector<1x32xf32> to vector<16x32xf32>
    %152 = arith.addf %148, %151 : vector<16x32xf32>
    %153 = arith.addf %125, %152 : vector<16x32xf32>
    %c0_63 = arith.constant 0 : index
    %c0_64 = arith.constant 0 : index
    %c0_65 = arith.constant 0 : index
    %154 = vector.load %arg15[%c0_63, %c0_64, %c0_65] : memref<1x1x32xf32, #tpu.memory_space<vmem>>, vector<1x1x32xf32>
    %155 = vector.shape_cast %154 : vector<1x1x32xf32> to vector<1x32xf32>
    %c0_66 = arith.constant 0 : index
    %c0_67 = arith.constant 0 : index
    %c0_68 = arith.constant 0 : index
    %156 = vector.load %arg16[%c0_66, %c0_67, %c0_68] : memref<1x1x32xf32, #tpu.memory_space<vmem>>, vector<1x1x32xf32>
    %157 = vector.shape_cast %156 : vector<1x1x32xf32> to vector<1x32xf32>
    %cst_69 = arith.constant dense<0.000000e+00> : vector<16xf32>
    %158 = vector.multi_reduction <add>, %153, %cst_69 [1] : vector<16x32xf32> to vector<16xf32>
    %159 = vector.shape_cast %158 : vector<16xf32> to vector<16x1xf32>
    %cst_70 = arith.constant 3.200000e+01 : f32
    %160 = vector.broadcast %cst_70 : f32 to vector<16x1xf32>
    %161 = arith.divf %159, %160 : vector<16x1xf32>
    %162 = vector.broadcast %161 : vector<16x1xf32> to vector<16x32xf32>
    %163 = arith.subf %153, %162 : vector<16x32xf32>
    %164 = arith.mulf %163, %163 : vector<16x32xf32>
    %cst_71 = arith.constant dense<0.000000e+00> : vector<16xf32>
    %165 = vector.multi_reduction <add>, %164, %cst_71 [1] : vector<16x32xf32> to vector<16xf32>
    %166 = vector.shape_cast %165 : vector<16xf32> to vector<16x1xf32>
    %cst_72 = arith.constant 3.200000e+01 : f32
    %167 = vector.broadcast %cst_72 : f32 to vector<16x1xf32>
    %168 = arith.divf %166, %167 : vector<16x1xf32>
    %cst_73 = arith.constant 9.99999996E-13 : f32
    %169 = vector.broadcast %cst_73 : f32 to vector<16x1xf32>
    %170 = arith.addf %168, %169 : vector<16x1xf32>
    %171 = math.rsqrt %170 : vector<16x1xf32>
    %172 = vector.broadcast %171 : vector<16x1xf32> to vector<16x32xf32>
    %173 = arith.mulf %163, %172 : vector<16x32xf32>
    %174 = vector.broadcast %155 : vector<1x32xf32> to vector<16x32xf32>
    %175 = arith.mulf %173, %174 : vector<16x32xf32>
    %176 = vector.broadcast %157 : vector<1x32xf32> to vector<16x32xf32>
    %177 = arith.addf %175, %176 : vector<16x32xf32>
    %c0_74 = arith.constant 0 : index
    %c0_75 = arith.constant 0 : index
    %178 = vector.load %arg22[%c0_74, %c0_75] : memref<16x32xf32, #tpu.memory_space<vmem>>, vector<16x32xf32>
    tpu.vector_store %arg22[%c0_74, %c0_75], %177 {strides = array<i32>} : memref<16x32xf32, #tpu.memory_space<vmem>>, vector<16x32xf32>,
    %c1_i32 = arith.constant 1 : i32
    %179 = arith.cmpi eq, %arg0, %c1_i32 : i32
    %180 = arith.extui %179 : i1 to i32
    %c0_i32_76 = arith.constant 0 : i32
    %181 = arith.cmpi ne, %180, %c0_i32_76 : i32
    scf.if %181 {
      %182 = vector.extract_strided_slice %177 {offsets = [0, 0], sizes = [1, 32], strides = [1, 1]} : vector<16x32xf32> to vector<1x32xf32>
      %183 = vector.extract_strided_slice %177 {offsets = [8, 0], sizes = [1, 32], strides = [1, 1]} : vector<16x32xf32> to vector<1x32xf32>
      %184 = tpu.concatenate %182, %183 in 0 : vector<1x32xf32>, vector<1x32xf32> -> vector<2x32xf32>
      %c0_77 = arith.constant 0 : index
      %c0_78 = arith.constant 0 : index
      %185 = vector.load %arg17[%c0_77, %c0_78] : memref<32x32xf32, #tpu.memory_space<vmem>>, vector<32x32xf32>
      %cst_79 = arith.constant dense<0.000000e+00> : vector<2x32xf32>
      %186 = tpu.matmul %184, %185, %cst_79 {dimension_numbers = #tpu.dot_dimension_numbers<[1], [0], [0], [1], [0, 0, 1, 1], [], []>} : vector<2x32xf32>, vector<32x32xf32>, vector<2x32xf32> -> vector<2x32xf32>
      %c0_80 = arith.constant 0 : index
      %c0_81 = arith.constant 0 : index
      %187 = vector.load %arg18[%c0_80, %c0_81] : memref<1x32xf32, #tpu.memory_space<vmem>>, vector<1x32xf32>
      %188 = vector.broadcast %187 : vector<1x32xf32> to vector<2x32xf32>
      %189 = arith.addf %186, %188 : vector<2x32xf32>
      %190 = math.tanh %189 : vector<2x32xf32>
      %c0_82 = arith.constant 0 : index
      %c0_83 = arith.constant 0 : index
      %191 = vector.load %arg19[%c0_82, %c0_83] : memref<32x128xf32, #tpu.memory_space<vmem>>, vector<32x128xf32>
      %cst_84 = arith.constant dense<0.000000e+00> : vector<2x128xf32>
      %192 = tpu.matmul %190, %191, %cst_84 {dimension_numbers = #tpu.dot_dimension_numbers<[1], [0], [0], [1], [0, 0, 1, 1], [], []>} : vector<2x32xf32>, vector<32x128xf32>, vector<2x128xf32> -> vector<2x128xf32>
      %c0_85 = arith.constant 0 : index
      %c0_86 = arith.constant 0 : index
      %193 = vector.load %arg20[%c0_85, %c0_86] : memref<1x128xf32, #tpu.memory_space<vmem>>, vector<1x128xf32>
      %194 = vector.broadcast %193 : vector<1x128xf32> to vector<2x128xf32>
      %195 = arith.addf %192, %194 : vector<2x128xf32>
      %cst_87 = arith.constant dense<0xFF800000> : vector<2xf32>
      %196 = vector.multi_reduction <maximumf>, %195, %cst_87 [1] : vector<2x128xf32> to vector<2xf32>
      %197 = vector.shape_cast %196 : vector<2xf32> to vector<2x1xf32>
      %198 = vector.broadcast %197 : vector<2x1xf32> to vector<2x128xf32>
      %199 = arith.subf %195, %198 : vector<2x128xf32>
      %200 = math.exp %199 : vector<2x128xf32>
      %cst_88 = arith.constant dense<0.000000e+00> : vector<2xf32>
      %201 = vector.multi_reduction <add>, %200, %cst_88 [1] : vector<2x128xf32> to vector<2xf32>
      %202 = vector.shape_cast %201 : vector<2xf32> to vector<2x1xf32>
      %203 = vector.broadcast %202 : vector<2x1xf32> to vector<2x128xf32>
      %204 = arith.divf %200, %203 : vector<2x128xf32>
      %c0_89 = arith.constant 0 : index
      %c0_90 = arith.constant 0 : index
      %205 = vector.load %arg21[%c0_89, %c0_90] : memref<2x128xf32, #tpu.memory_space<vmem>>, vector<2x128xf32>
      tpu.vector_store %arg21[%c0_89, %c0_90], %204 {strides = array<i32>} : memref<2x128xf32, #tpu.memory_space<vmem>>, vector<2x128xf32>,
    } else {
    }
    return
  }
  func.func @transform_0(%arg0: i32) -> (i32, i32) {
    %c0_i32 = arith.constant 0 : i32
    %c0_i32_0 = arith.constant 0 : i32
    %c0_i32_1 = arith.constant 0 : i32
    return %c0_i32, %c0_i32_0 : i32, i32
  }
  func.func @transform_1(%arg0: i32) -> (i32, i32, i32) {
    %c0_i32 = arith.constant 0 : i32
    %c0_i32_0 = arith.constant 0 : i32
    %c0_i32_1 = arith.constant 0 : i32
    %c0_i32_2 = arith.constant 0 : i32
    return %c0_i32, %c0_i32_0, %c0_i32_1 : i32, i32, i32
  }
  func.func @transform_2(%arg0: i32) -> (i32, i32) {
    %c0_i32 = arith.constant 0 : i32
    %c0_i32_0 = arith.constant 0 : i32
    %c0_i32_1 = arith.constant 0 : i32
    return %c0_i32, %c0_i32_0 : i32, i32
  }
  func.func @transform_3(%arg0: i32) -> (i32, i32) {
    %c0_i32 = arith.constant 0 : i32
    %c0_i32_0 = arith.constant 0 : i32
    %c0_i32_1 = arith.constant 0 : i32
    return %c0_i32, %c0_i32_0 : i32, i32
  }
  func.func @transform_4(%arg0: i32) -> (i32, i32, i32) {
    %c0_i32 = arith.constant 0 : i32
    %c0_i32_0 = arith.constant 0 : i32
    %c0_i32_1 = arith.constant 0 : i32
    return %arg0, %c0_i32, %c0_i32_0 : i32, i32, i32
  }
  func.func @transform_5(%arg0: i32) -> (i32, i32, i32) {
    %c0_i32 = arith.constant 0 : i32
    %c0_i32_0 = arith.constant 0 : i32
    %c0_i32_1 = arith.constant 0 : i32
    return %arg0, %c0_i32, %c0_i32_0 : i32, i32, i32
  }
  func.func @transform_6(%arg0: i32) -> (i32, i32, i32) {
    %c0_i32 = arith.constant 0 : i32
    %c0_i32_0 = arith.constant 0 : i32
    %c0_i32_1 = arith.constant 0 : i32
    return %arg0, %c0_i32, %c0_i32_0 : i32, i32, i32
  }
  func.func @transform_7(%arg0: i32) -> (i32, i32, i32) {
    %c0_i32 = arith.constant 0 : i32
    %c0_i32_0 = arith.constant 0 : i32
    %c0_i32_1 = arith.constant 0 : i32
    return %arg0, %c0_i32, %c0_i32_0 : i32, i32, i32
  }
  func.func @transform_8(%arg0: i32) -> (i32, i32, i32) {
    %c0_i32 = arith.constant 0 : i32
    %c0_i32_0 = arith.constant 0 : i32
    %c0_i32_1 = arith.constant 0 : i32
    return %arg0, %c0_i32, %c0_i32_0 : i32, i32, i32
  }
  func.func @transform_9(%arg0: i32) -> (i32, i32, i32) {
    %c0_i32 = arith.constant 0 : i32
    %c0_i32_0 = arith.constant 0 : i32
    %c0_i32_1 = arith.constant 0 : i32
    return %arg0, %c0_i32, %c0_i32_0 : i32, i32, i32
  }
  func.func @transform_10(%arg0: i32) -> (i32, i32, i32) {
    %c0_i32 = arith.constant 0 : i32
    %c0_i32_0 = arith.constant 0 : i32
    %c0_i32_1 = arith.constant 0 : i32
    return %arg0, %c0_i32, %c0_i32_0 : i32, i32, i32
  }
  func.func @transform_11(%arg0: i32) -> (i32, i32, i32) {
    %c0_i32 = arith.constant 0 : i32
    %c0_i32_0 = arith.constant 0 : i32
    %c0_i32_1 = arith.constant 0 : i32
    return %arg0, %c0_i32, %c0_i32_0 : i32, i32, i32
  }
  func.func @transform_12(%arg0: i32) -> (i32, i32, i32) {
    %c0_i32 = arith.constant 0 : i32
    %c0_i32_0 = arith.constant 0 : i32
    %c0_i32_1 = arith.constant 0 : i32
    return %arg0, %c0_i32, %c0_i32_0 : i32, i32, i32
  }
  func.func @transform_13(%arg0: i32) -> (i32, i32, i32) {
    %c0_i32 = arith.constant 0 : i32
    %c0_i32_0 = arith.constant 0 : i32
    %c0_i32_1 = arith.constant 0 : i32
    return %arg0, %c0_i32, %c0_i32_0 : i32, i32, i32
  }
  func.func @transform_14(%arg0: i32) -> (i32, i32, i32) {
    %c0_i32 = arith.constant 0 : i32
    %c0_i32_0 = arith.constant 0 : i32
    %c0_i32_1 = arith.constant 0 : i32
    return %arg0, %c0_i32, %c0_i32_0 : i32, i32, i32
  }
  func.func @transform_15(%arg0: i32) -> (i32, i32, i32) {
    %c0_i32 = arith.constant 0 : i32
    %c0_i32_0 = arith.constant 0 : i32
    %c0_i32_1 = arith.constant 0 : i32
    return %arg0, %c0_i32, %c0_i32_0 : i32, i32, i32
  }
  func.func @transform_16(%arg0: i32) -> (i32, i32) {
    %c0_i32 = arith.constant 0 : i32
    %c0_i32_0 = arith.constant 0 : i32
    %c0_i32_1 = arith.constant 0 : i32
    return %c0_i32, %c0_i32_0 : i32, i32
  }
  func.func @transform_17(%arg0: i32) -> (i32, i32) {
    %c0_i32 = arith.constant 0 : i32
    %c0_i32_0 = arith.constant 0 : i32
    %c0_i32_1 = arith.constant 0 : i32
    return %c0_i32, %c0_i32_0 : i32, i32
  }
  func.func @transform_18(%arg0: i32) -> (i32, i32) {
    %c0_i32 = arith.constant 0 : i32
    %c0_i32_0 = arith.constant 0 : i32
    %c0_i32_1 = arith.constant 0 : i32
    return %c0_i32, %c0_i32_0 : i32, i32
  }
  func.func @transform_19(%arg0: i32) -> (i32, i32) {
    %c0_i32 = arith.constant 0 : i32
    %c0_i32_0 = arith.constant 0 : i32
    %c0_i32_1 = arith.constant 0 : i32
    return %c0_i32, %c0_i32_0 : i32, i32
  }
  func.func @transform_20(%arg0: i32) -> (i32, i32) {
    %c0_i32 = arith.constant 0 : i32
    %c0_i32_0 = arith.constant 0 : i32
    %c0_i32_1 = arith.constant 0 : i32
    return %c0_i32, %c0_i32_0 : i32, i32
  }
}

</mosaic_0001>

<bundles_post_ra>
// kernel: bert_sentiment_forward.1
= control target key start
LH: loop header
LB: loop body
LE: loop exit
PB: predicated region body
PF: predicated region fallthrough
CT: control target
= control target key end

     0   :  { %s4016_s0 = inlined_call_operand.vmem [shape: f32[16,32], index: 0, kind: input, shape index: {}]   ;;  %s4017_s1 = inlined_call_operand.vmem [shape: f32[2,1,8], index: 1, kind: input, shape index: {}]   ;;  %s4018_s2 = inlined_call_operand.vmem [shape: f32[1,32], index: 2, kind: input, shape index: {}]   ;;  %s4019_s3 = inlined_call_operand.vmem [shape: f32[1,32], index: 3, kind: input, shape index: {}]   ;;  %s4020_s4 = inlined_call_operand.vmem [shape: f32[2,32,96], index: 4, kind: input, shape index: {}]   ;;  %s4021_s5 = inlined_call_operand.vmem [shape: f32[2,1,96], index: 5, kind: input, shape index: {}]   ;;  %s4022_s6 = inlined_call_operand.vmem [shape: f32[2,32,32], index: 6, kind: input, shape index: {}]   ;;  %s4023_s7 = inlined_call_operand.vmem [shape: f32[2,1,32], index: 7, kind: input, shape index: {}]   ;;  %s4024_s8 = inlined_call_operand.vmem [shape: f32[2,1,32], index: 8, kind: input, shape index: {}]   ;;  %s4025_s9 = inlined_call_operand.vmem [shape: f32[2,1,32], index: 9, kind: input, shape index: {}]   ;;  %s4026_s10 = inlined_call_operand.vmem [shape: f32[2,32,64], index: 10, kind: input, shape index: {}]   ;;  %s4027_s11 = inlined_call_operand.vmem [shape: f32[2,1,64], index: 11, kind: input, shape index: {}]   ;;  %s4028_s12 = inlined_call_operand.vmem [shape: f32[2,64,32], index: 12, kind: input, shape index: {}]   ;;  %s4029_s13 = inlined_call_operand.vmem [shape: f32[2,1,32], index: 13, kind: input, shape index: {}]   ;;  %s4030_s14 = inlined_call_operand.vmem [shape: f32[2,1,32], index: 14, kind: input, shape index: {}]   ;;  %s4031_s15 = inlined_call_operand.vmem [shape: f32[2,1,32], index: 15, kind: input, shape index: {}]   ;;  %s4032_s16 = inlined_call_operand.vmem [shape: f32[32,32], index: 16, kind: input, shape index: {}]   ;;  %s4033_s17 = inlined_call_operand.vmem [shape: f32[1,32], index: 17, kind: input, shape index: {}]   ;;  %s4034_s18 = inlined_call_operand.vmem [shape: f32[32,128], index: 18, kind: input, shape index: {}]   ;;  %s4035_s19 = inlined_call_operand.vmem [shape: f32[1,128], index: 19, kind: input, shape index: {}]   ;;  %s4036_s20 = inlined_call_operand.hbm [shape: f32[2,128], index: 20, kind: output, shape index: {}]  }
   0x1   :  { %4043 = sst [smem:[#allocation7_spill]] %s4016_s0 }
   0x2   :  { %4044 = sst [smem:[#allocation8_spill]] %s4017_s1 }
   0x3   :  { %4045 = sst [smem:[#allocation9_spill]] %s4018_s2 }
   0x4   :  { %4046 = sst [smem:[#allocation10_spill]] %s4019_s3 }
   0x5   :  { %4047 = sst [smem:[#allocation11_spill]] %s4020_s4 }
   0x6   :  { %4048 = sst [smem:[#allocation12_spill]] %s4022_s6 }
   0x7   :  { %4049 = sst [smem:[#allocation13_spill]] %s4032_s16 }
   0x8   :  { %4050 = sst [smem:[#allocation14_spill]] %s4033_s17 }
   0x9   :  { %4051 = sst [smem:[#allocation15_spill]] %s4034_s18 }
   0xa   :  { %4052 = sst [smem:[#allocation16_spill]] %s4035_s19 }
   0xb   :  { %4053 = sst [smem:[#allocation17_spill]] %s4036_s20 }
   0xc   :  { %25 = vsyncpa [#allocation4], 0  ;;  %s3638_s1 = smov 0  }
   0xd LB: > { %4054 = sst [smem:[#allocation6_spill]] %s3511_s1  ;;  %s3644_s22 = sadd.s32 4294967295, %s3511_s1   ;;  %s3511_s1 = sphi %s3638_s1, %s31_s1  }
   0xe   : > { %p3044_p0 = scmp.ge.s32.totalorder %s3511_s1, 1  ;;  %p652_p1 = scmp.lt.s32.totalorder %s3511_s1, 3 }
  0x10   : > { %p653_p2 = pnand %p3044_p0, %p652_p1 }
  0x11   : > { %p744_p3 = scmp.lt.s32.totalorder (!%p653_p2), %s3644_s22, 1  ;;  %s4055_s28 = sld [smem:[#allocation11_spill]] (!%p653_p2) }
  0x12   : > { %656 = sbr.rel (%p653_p2) target bundleno = 5243 (0x147b), region = 100  ;;  %s4056_s6 = sld [smem:[#allocation12_spill]] (!%p653_p2) }
  0x13   : > { %p3053_p4 = scmp.ne.s32.totalorder (!%p653_p2), %s3644_s22, 0 }
  0x19   : > { %s3650_s23 = scalar_select %p744_p3, %s3644_s22, 1 }
  0x1a   : > { %791 = sbr.rel (%p3053_p4) target bundleno = 351 (0x15f), region = 104  ;;  %s4057_s1 = sld [smem:[#allocation7_spill]] (!%p3053_p4)  ;;  %vm796_vm0 = vcmask (!%p3053_p4), 261120  }
  0x1b   : > { %s3107_s24 = sshll.u32 %s3650_s23, 5  ;;  %s3110_s16 = sshll.u32 %s3650_s23, 6 }
  0x1c   : > { %s3660_s4 = scalar_lea.vmem %s4055_s28, %s3107_s24  ;;  %s3665_s0 = scalar_lea.vmem %s4056_s6, %s3107_s24 }
  0x1d   : > { %s3682_s28 = scalar_lea.vmem %s4026_s10, %s3107_s24  ;;  %s3692_s20 = scalar_lea.vmem %s4028_s12, %s3110_s16 }
  0x1e   : > { %s781_s2 = scalar_lea.vmem %s4029_s13, %s3650_s23  ;;  %s784_s26 = scalar_lea.vmem %s4030_s14, %s3650_s23 }
  0x1f   : > { %s787_s18 = scalar_lea.vmem %s4031_s15, %s3650_s23  ;;  %s4059_s17 = sld [smem:[#allocation9_spill]] (!%p3053_p4) }
  0x20   : > { %s4058_s21 = smov (!%p3053_p4), %s4057_s1  ;;  %v792_v0 = vld [vmem:[%s4057_s1] sm:$0xff] (!%p3053_p4)  ;;  %s4060_s24 = sld [smem:[#allocation10_spill]] (!%p3053_p4) }
  0x21   : > { %v793_v1 = vld [vmem:[%s4058_s21 + $0x8] sm:$0xff]  ;;  %v797_v2 = vsel %vm796_vm0, %v792_v0, 0.0 }
  0x22   : > { %798 = vadd.xlane.f32.xlu0 %v797_v2  ;;  %v800_v3 = vsel %vm796_vm0, %v793_v1, 0.0 }
  0x25   : > { %v3054_v21 = vld [vmem:[%s4059_s17] ss:$0 sm:$0xff] }
  0x26   : > { %801 = vadd.xlane.f32.xlu0 %v800_v3  ;;  %v3055_v23 = vld [vmem:[%s4060_s24] ss:$0 sm:$0xff] }
  0xaf   : > { %v799_v4 = vpop.xlane.xlu0 %798 }
  0xb0   : > { %v804_v5 = vmul.f32 0.03125, %v799_v4 }
  0xb2   : > { %v806_v6 = vsub.f32 %v792_v0, %v804_v5 }
  0xb3   : > { %v802_v7 = vpop.xlane.xlu0 %801 }
  0xb4   : > { %v805_v8 = vmul.f32 0.03125, %v802_v7  ;;  %v808_v9 = vmul.f32 %v806_v6, %v806_v6 }
  0xb6   : > { %v807_v10 = vsub.f32 %v793_v1, %v805_v8  ;;  %v810_v11 = vsel %vm796_vm0, %v808_v9, 0.0 }
  0xb7   : > { %811 = vadd.xlane.f32.xlu1 %v810_v11 }
  0xb8   : > { %v809_v12 = vmul.f32 %v807_v10, %v807_v10 }
  0xba   : > { %v813_v13 = vsel %vm796_vm0, %v809_v12, 0.0 }
  0xbb   : > { %814 = vadd.xlane.f32.xlu1 %v813_v13 }
 0x144   : > { %v812_v14 = vpop.xlane.xlu1 %811 }
 0x145   : > { %v816_v15 = vmul.f32 0.03125, %v812_v14 }
 0x147   : > { %v818_v16 = vadd.f32 1e-12, %v816_v15 }
 0x148   : > { %v815_v17 = vpop.xlane.xlu1 %814 }
 0x149   : > { %3421 = vrsqrt.f32 %v818_v16  ;;  %v817_v18 = vmul.f32 0.03125, %v815_v17 }
 0x14b   : > { %v819_v19 = vadd.f32 1e-12, %v817_v18 }
 0x14d   : > { %3423 = vrsqrt.f32 %v819_v19 }
 0x153   : > { %v3422_v20 = vpop.eup %3421 }
 0x154   : > { %v822_v22 = vmul.f32 %v3422_v20, %v806_v6 }
 0x156   : > { %v830_v24 = vmul.f32 %v3054_v21, %v822_v22 }
 0x157   : > { %v3424_v25 = vpop.eup %3423 }
 0x158   : > { %v838_v26 = vadd.f32 %v3055_v23, %v830_v24  ;;  %v823_v27 = vmul.f32 %v3424_v25, %v807_v10 }
 0x15a   : > { %840 = vst.msk [vmem:[#allocation2] sm:$0xff] %vm796_vm0, %v838_v26  ;;  %v831_v28 = vmul.f32 %v3054_v21, %v823_v27 }
 0x15c   : > { %v839_v29 = vadd.f32 %v3055_v23, %v831_v28 }
 0x15e   : > { %841 = vst.msk [vmem:[#allocation2 + $0x8] sm:$0xff] %vm796_vm0, %v839_v29 }
 0x15f PF: > { %v844_v30 = vld [vmem:[%s3660_s4] sm:$0xff]  ;;  %v845_v31 = vld [vmem:[%s3660_s4 + $0x8] sm:$0xff]  ;;  %v846_v32 = vld [vmem:[%s3660_s4 + $0x10] sm:$0xff]  ;;  %vm855_vm1 = vcmask 261120   ;;  %v3513_v38 = vmov 0.0   ;;  %vm3514_vm2 = vmmov 0   ;;  %s4061_s29 = scalar_lea.vmem %s4021_s5, %s3650_s23 }
 0x160   : > { %v3335_v33 = vpack.c.bf16 %v845_v31, %v844_v30  ;;  %v847_v34 = vld [vmem:[%s3660_s4 + $0x18] sm:$0xff]  ;;  %3202 = vmatprep.subr.mxu0 %v3513_v38  ;;  %3204 = vmatprep.mubr.msk.f32.mxu0 %vm3514_vm2, %v3513_v38  ;;  %v3056_v39 = vld [vmem:[%s4061_s29] ss:$0 sm:$0xff]  ;;  %s3515_s30 = smov 96   ;;  %vm954_vm3 = vcmask 64512   ;;  %s4062_s6 = sld [smem:[#allocation8_spill]] }
 0x161   : > { %v3729_v35 = vld [vmem:[#allocation2] sm:$0xff]  ;;  %v3339_v36 = vpack.c.bf16 %v847_v34, %v846_v32  ;;  %s3516_s19 = smov 64   ;;  %s3517_s25 = smov 88   ;;  %vm2299_vm4 = vcmask 195584   ;;  %vm2296_vm5 = vcmask 130048   ;;  %vm2566_vm6 = vcmask 523264  }
 0x162   : > { %3189 = vmatprep.mubr.msk.f32.mxu1 %vm855_vm1, %v3729_v35  ;;  %3336 = vmatprep.subr.bf16.mxu1 %v3335_v33  ;;  %s3518_s24 = smov 120   ;;  %s3519_s4 = smov 56  }
 0x163   : > { %3338 = vmatpush3.bf16.msra.mxu1 %v3335_v33  ;;  %s3520_s27 = smov 80   ;;  %s3521_s29 = smov 112  }
 0x164   : > { %3340 = vmatprep.subr.bf16.mxu1 %v3339_v36  ;;  %s3523_s1 = smov 72   ;;  %s3524_s16 = smov 104  }
 0x165   : > { %v3733_v37 = vld [vmem:[#allocation2 + $0x8] sm:$0xff]  ;;  %s3525_s3 = smov 40   ;;  %s3526_s17 = smov 8  }
 0x166   : > { %v3769_v46 = vld [vmem:[%s4062_s6] ss:$0 sm:$0xff]  ;;  %v3775_v50 = vld [vmem:[%s4062_s6 + $0x1] ss:$0 sm:$0xff]  ;;  %p3098_p5 = scmp.ne.s32.totalorder %s3644_s22, 1 }
 0x167   : > { %3342 = vmatpush3.bf16.msra.mxu1 %v3339_v36  ;;  %vm3530_vm7 = vmmov (!%p3098_p5), 0   ;;  %vm2703_vm8 = vcmask (!%p3098_p5), 1040384   ;;  %vm2874_vm9 = vcmask (!%p3098_p5), 1041408  }
 0x168   : > { %3192 = vmatprep.subr.mxu1 %v3513_v38 }
 0x16a   : > { %3190 = vmatmul.mubr.msk.f32.vlgmr.msra.gmra.mrb[0].mxu1 %vm855_vm1, %v3733_v37 }
 0x16b   : > { %3194 = vmatprep.mubr.msk.f32.mxu1 %vm3514_vm2, %v3513_v38 }
 0x23d   : > { %v3191_v40 = vpop.f32.mrb[0].mxu1 }
 0x23e   : > { %v928_v41 = vpop.f32.mrb[1].mxu1  ;;  %v3751_v43 = vadd.f32 %v3191_v40, %v3056_v39 }
 0x23f   : > { %v3748_v42 = vadd.f32 %v3056_v39, %v928_v41 }
 0x241   : > { %952 = vrot.lane.b32.xlu0 %v3748_v42, %s3515_s30 }
 0x245   : > { %1030 = vrot.lane.b32.xlu0 %v3751_v43, %s3515_s30  ;;  %s3522_s30 = smov 48  }
 0x2b3   : > { %v953_v44 = vpop.permute.xlu0 %952 }
 0x2b4   : > { %3193 = vmatpush3.xpose.msk.msra.mxu1 %vm954_vm3, %v953_v44 }
 0x2b5   : > { %3197 = vmatprep.subr.mxu1 %v3513_v38 }
 0x2b7   : > { %3195 = vmatmul.mubr.msk.f32.vlgmr.msra.gmra.mrb[2].mxu1 %vm954_vm3, %v3748_v42  ;;  %v1031_v45 = vpop.permute.xlu0 %1030 }
 0x2b8   : > { %3198 = vmatpush3.xpose.msk.msra.mxu1 %vm954_vm3, %v1031_v45  ;;  %3199 = vmatprep.mubr.msk.f32.mxu1 %vm3514_vm2, %v3513_v38 }
 0x2b9   : > { %3207 = vmatprep.subr.mxu1 %v3513_v38 }
 0x2bb   : > { %3200 = vmatmul.mubr.msk.f32.vlgmr.msra.gmra.mrb[4].mxu1 %vm954_vm3, %v3751_v43 }
 0x2bc   : > { %3209 = vmatprep.mubr.msk.f32.mxu1 %vm3514_vm2, %v3513_v38 }
 0x38a   : > { %v1025_v47 = vpop.f32.mrb[2].mxu1 }
 0x38b   : > { %v1026_v48 = vadd.f32 %v3769_v46, %v1025_v47  ;;  %v3196_v49 = vpop.f32.mrb[3].mxu1 }
 0x38d   : > { %v1106_v51 = vsel %vm954_vm3, %v1026_v48, -inf }
 0x38e   : > { %1107 = vmax.xlane.f32.xlu1 %v1106_v51  ;;  %v1102_v52 = vpop.f32.mrb[4].mxu1 }
 0x38f   : > { %v1103_v53 = vadd.f32 %v3775_v50, %v1102_v52  ;;  %v3201_v54 = vpop.f32.mrb[5].mxu1 }
 0x391   : > { %v1109_v55 = vsel %vm954_vm3, %v1103_v53, -inf }
 0x392   : > { %1110 = vmax.xlane.f32.xlu1 %v1109_v55 }
 0x3a3   : > { %1128 = vrot.lane.b32.xlu1 %v3748_v42, %s3516_s19 }
 0x3a7   : > { %1204 = vrot.lane.b32.xlu1 %v3751_v43, %s3516_s19  ;;  %s3527_s19 = smov 16  }
 0x3ab   : > { %1282 = vrot.lane.b32.xlu1 %v3748_v42, %s3517_s25 }
 0x3af   : > { %1360 = vrot.lane.b32.xlu1 %v3751_v43, %s3517_s25  ;;  %s3528_s25 = smov 24  }
 0x41b   : > { %v1108_v56 = vpop.xlane.xlu1 %1107 }
 0x41c   : > { %v1112_v57 = vsub.f32 %v1026_v48, %v1108_v56 }
 0x41e   : > { %v1114_v58 = vmul.f32 1.442695, %v1112_v57 }
 0x41f   : > { %v1111_v59 = vpop.xlane.xlu1 %1110 }
 0x420   : > { %3425 = vpow2.f32 %v1114_v58  ;;  %v1113_v60 = vsub.f32 %v1103_v53, %v1111_v59 }
 0x422   : > { %v1116_v61 = vmul.f32 1.442695, %v1113_v60 }
 0x423   : > { %v1129_v62 = vpop.permute.xlu1 %1128 }
 0x424   : > { %3427 = vpow2.f32 %v1116_v61  ;;  %3203 = vmatpush3.msra.mxu0 %v1129_v62 }
 0x425   : > { %3212 = vmatprep.subr.mxu0 %v3513_v38 }
 0x427   : > { %v1205_v63 = vpop.permute.xlu1 %1204 }
 0x428   : > { %3208 = vmatpush3.msra.mxu1 %v1205_v63 }
 0x429   : > { %3217 = vmatprep.subr.mxu1 %v3513_v38 }
 0x42a   : > { %v3426_v0 = vpop.eup %3425 }
 0x42b   : > { %v1118_v1 = vsel %vm954_vm3, %v3426_v0, 0.0  ;;  %v1283_v4 = vpop.permute.xlu1 %1282 }
 0x42c   : > { %1119 = vadd.xlane.f32.xlu0 %v1118_v1 }
 0x42e   : > { %v3428_v2 = vpop.eup %3427 }
 0x42f   : > { %v1121_v3 = vsel %vm954_vm3, %v3428_v2, 0.0  ;;  %v1361_v5 = vpop.permute.xlu1 %1360 }
 0x430   : > { %1122 = vadd.xlane.f32.xlu1 %v1121_v3 }
 0x441   : > { %1358 = vrot.lane.b32.xlu1 %v3751_v43, %s3518_s24 }
 0x442   : > { %1280 = vrot.lane.b32.xlu0 %v3748_v42, %s3518_s24 }
 0x4b9   : > { %v1120_v6 = vpop.xlane.xlu0 %1119 }
 0x4ba   : > { %3429 = vrcp.f32 %v1120_v6 }
 0x4bd   : > { %v1123_v7 = vpop.xlane.xlu1 %1122  ;;  %v1281_v12 = vpop.permute.xlu0 %1280 }
 0x4be   : > { %3431 = vrcp.f32 %v1123_v7 }
 0x4c1   : > { %v1359_v13 = vpop.permute.xlu1 %1358 }
 0x4c4   : > { %v3430_v8 = vpop.eup %3429 }
 0x4c5   : > { %v1126_v9 = vmul.f32 %v3430_v8, %v3426_v0 }
 0x4c7   : > { %3205 = vmatmul.mubr.msk.f32.vlgmr.msra.gmra.mrb[0].mxu0 %vm954_vm3, %v1126_v9 }
 0x4c8   : > { %v3432_v10 = vpop.eup %3431  ;;  %3213 = vmatpush3.xpose.msk.msra.mxu0 %vm954_vm3, %v1283_v4  ;;  %3214 = vmatprep.mubr.msk.f32.mxu0 %vm3514_vm2, %v3513_v38 }
 0x4c9   : > { %v1127_v11 = vmul.f32 %v3432_v10, %v3428_v2  ;;  %3222 = vmatprep.subr.mxu0 %v3513_v38 }
 0x4cb   : > { %3210 = vmatmul.mubr.msk.f32.vlgmr.msra.gmra.mrb[6].mxu1 %vm954_vm3, %v1127_v11  ;;  %3215 = vmatmul.mubr.msk.f32.vlgmr.msra.gmra.mrb[2].mxu0 %vm954_vm3, %v1281_v12 }
 0x4cc   : > { %3218 = vmatpush3.xpose.msk.msra.mxu1 %vm954_vm3, %v1361_v5  ;;  %3219 = vmatprep.mubr.msk.f32.mxu1 %vm3514_vm2, %v3513_v38 }
 0x4cd   : > { %3227 = vmatprep.subr.mxu1 %v3513_v38  ;;  %3224 = vmatprep.mubr.msk.f32.mxu0 %vm3514_vm2, %v3513_v38 }
 0x4cf   : > { %3220 = vmatmul.mubr.msk.f32.vlgmr.msra.gmra.mrb[8].mxu1 %vm954_vm3, %v1359_v13 }
 0x4d0   : > { %3229 = vmatprep.mubr.msk.f32.mxu1 %vm3514_vm2, %v3513_v38 }
 0x59a   : > { %v3806_v14 = vpop.f32.mrb[0].mxu0 }
 0x59b   : > { %v3206_v15 = vpop.f32.mrb[1].mxu0 }
 0x59e   : > { %v3808_v16 = vpop.f32.mrb[6].mxu1  ;;  %v1354_v17 = vpop.f32.mrb[2].mxu0 }
 0x59f   : > { %v1355_v18 = vadd.f32 %v3769_v46, %v1354_v17  ;;  %v3211_v19 = vpop.f32.mrb[7].mxu1  ;;  %v3216_v20 = vpop.f32.mrb[3].mxu0 }
 0x5a1   : > { %v1436_v21 = vsel %vm954_vm3, %v1355_v18, -inf }
 0x5a2   : > { %v1432_v22 = vpop.f32.mrb[8].mxu1  ;;  %1437 = vmax.xlane.f32.xlu1 %v1436_v21 }
 0x5a3   : > { %v1433_v23 = vadd.f32 %v3775_v50, %v1432_v22  ;;  %v3221_v24 = vpop.f32.mrb[9].mxu1 }
 0x5a5   : > { %v1439_v25 = vsel %vm954_vm3, %v1433_v23, -inf }
 0x5a6   : > { %1440 = vmax.xlane.f32.xlu0 %v1439_v25 }
 0x5b3   : > { %1458 = vrot.lane.b32.xlu1 %v3748_v42, %s3519_s4 }
 0x5b7   : > { %1612 = vrot.lane.b32.xlu1 %v3748_v42, %s3520_s27 }
 0x5bb   : > { %1690 = vrot.lane.b32.xlu1 %v3751_v43, %s3520_s27 }
 0x5bc   : > { %1534 = vrot.lane.b32.xlu0 %v3751_v43, %s3519_s4  ;;  %s4063_s4 = scalar_lea.vmem %s4023_s7, %s3650_s23 }
 0x5c0   : > { %1610 = vrot.lane.b32.xlu0 %v3748_v42, %s3521_s29 }
 0x62f   : > { %v1438_v26 = vpop.xlane.xlu1 %1437 }
 0x630   : > { %v1442_v27 = vsub.f32 %v1355_v18, %v1438_v26 }
 0x632   : > { %v1444_v28 = vmul.f32 1.442695, %v1442_v27 }
 0x633   : > { %v1459_v29 = vpop.permute.xlu1 %1458  ;;  %v1441_v30 = vpop.xlane.xlu0 %1440 }
 0x634   : > { %3433 = vpow2.f32 %v1444_v28  ;;  %v1443_v31 = vsub.f32 %v1433_v23, %v1441_v30  ;;  %3223 = vmatpush3.msra.mxu0 %v1459_v29 }
 0x635   : > { %3232 = vmatprep.subr.mxu0 %v3513_v38 }
 0x636   : > { %v1446_v32 = vmul.f32 1.442695, %v1443_v31 }
 0x637   : > { %v1535_v33 = vpop.permute.xlu0 %1534  ;;  %v1613_v41 = vpop.permute.xlu1 %1612 }
 0x638   : > { %3435 = vpow2.f32 %v1446_v32  ;;  %3228 = vmatpush3.msra.mxu1 %v1535_v33 }
 0x639   : > { %3237 = vmatprep.subr.mxu1 %v3513_v38 }
 0x63b   : > { %v1691_v44 = vpop.permute.xlu1 %1690  ;;  %v1611_v53 = vpop.permute.xlu0 %1610 }
 0x63e   : > { %v3434_v34 = vpop.eup %3433 }
 0x63f   : > { %v1448_v36 = vsel %vm954_vm3, %v3434_v34, 0.0 }
 0x640   : > { %1449 = vadd.xlane.f32.xlu1 %v1448_v36 }
 0x642   : > { %v3436_v39 = vpop.eup %3435 }
 0x643   : > { %v1451_v40 = vsel %vm954_vm3, %v3436_v39, 0.0 }
 0x644   : > { %1452 = vadd.xlane.f32.xlu1 %v1451_v40 }
 0x655   : > { %1688 = vrot.lane.b32.xlu1 %v3751_v43, %s3521_s29  ;;  %s4067_s29 = sld [smem:[#allocation13_spill]] (!%p3098_p5) }
 0x6cd   : > { %v1450_v45 = vpop.xlane.xlu1 %1449 }
 0x6ce   : > { %3437 = vrcp.f32 %v1450_v45 }
 0x6d1   : > { %v1453_v47 = vpop.xlane.xlu1 %1452 }
 0x6d2   : > { %3439 = vrcp.f32 %v1453_v47 }
 0x6d5   : > { %v1689_v54 = vpop.permute.xlu1 %1688 }
 0x6d8   : > { %v3438_v48 = vpop.eup %3437 }
 0x6d9   : > { %v1456_v49 = vmul.f32 %v3438_v48, %v3434_v34 }
 0x6db   : > { %3225 = vmatmul.mubr.msk.f32.vlgmr.msra.gmra.mrb[4].mxu0 %vm954_vm3, %v1456_v49 }
 0x6dc   : > { %v3440_v51 = vpop.eup %3439  ;;  %3233 = vmatpush3.xpose.msk.msra.mxu0 %vm954_vm3, %v1613_v41  ;;  %3234 = vmatprep.mubr.msk.f32.mxu0 %vm3514_vm2, %v3513_v38 }
 0x6dd   : > { %v1457_v52 = vmul.f32 %v3440_v51, %v3436_v39  ;;  %3242 = vmatprep.subr.mxu0 %v3513_v38 }
 0x6df   : > { %3230 = vmatmul.mubr.msk.f32.vlgmr.msra.gmra.mrb[10].mxu1 %vm954_vm3, %v1457_v52  ;;  %3235 = vmatmul.mubr.msk.f32.vlgmr.msra.gmra.mrb[6].mxu0 %vm954_vm3, %v1611_v53 }
 0x6e0   : > { %3238 = vmatpush3.xpose.msk.msra.mxu1 %vm954_vm3, %v1691_v44  ;;  %3239 = vmatprep.mubr.msk.f32.mxu1 %vm3514_vm2, %v3513_v38 }
 0x6e1   : > { %3247 = vmatprep.subr.mxu1 %v3513_v38  ;;  %3244 = vmatprep.mubr.msk.f32.mxu0 %vm3514_vm2, %v3513_v38 }
 0x6e3   : > { %3240 = vmatmul.mubr.msk.f32.vlgmr.msra.gmra.mrb[12].mxu1 %vm954_vm3, %v1689_v54 }
 0x6e4   : > { %3249 = vmatprep.mubr.msk.f32.mxu1 %vm3514_vm2, %v3513_v38 }
 0x7ae   : > { %v3840_v55 = vpop.f32.mrb[4].mxu0 }
 0x7af   : > { %v3226_v56 = vpop.f32.mrb[5].mxu0 }
 0x7b2   : > { %v3842_v57 = vpop.f32.mrb[10].mxu1  ;;  %v1684_v58 = vpop.f32.mrb[6].mxu0 }
 0x7b3   : > { %v1685_v59 = vadd.f32 %v3769_v46, %v1684_v58  ;;  %v3231_v60 = vpop.f32.mrb[11].mxu1  ;;  %v3236_v61 = vpop.f32.mrb[7].mxu0 }
 0x7b4   : > { %v2302_v60 = vld [vmem:[%s3665_s0] sm:$0xff]  ;;  %v2303_v61 = vld [vmem:[%s3665_s0 + $0x8] sm:$0xff] }
 0x7b5   : > { %v1766_v62 = vsel %vm954_vm3, %v1685_v59, -inf }
 0x7b6   : > { %v1762_v63 = vpop.f32.mrb[12].mxu1  ;;  %1767 = vmax.xlane.f32.xlu0 %v1766_v62  ;;  %v2304_v62 = vld [vmem:[%s3665_s0 + $0x10] sm:$0xff] }
 0x7b7   : > { %v1763_v0 = vadd.f32 %v3775_v50, %v1762_v63  ;;  %v3241_v1 = vpop.f32.mrb[13].mxu1  ;;  %v2305_v63 = vld [vmem:[%s3665_s0 + $0x18] sm:$0xff] }
 0x7b9   : > { %v1769_v2 = vsel %vm954_vm3, %v1763_v0, -inf }
 0x7ba   : > { %1770 = vmax.xlane.f32.xlu1 %v1769_v2 }
 0x7cb   : > { %1788 = vrot.lane.b32.xlu1 %v3748_v42, %s3522_s30 }
 0x7cc   : > { %1864 = vrot.lane.b32.xlu0 %v3751_v43, %s3522_s30  ;;  %s4064_s30 = scalar_lea.vmem %s4024_s8, %s3650_s23 }
 0x7cf   : > { %1942 = vrot.lane.b32.xlu1 %v3748_v42, %s3523_s1 }
 0x7d3   : > { %2020 = vrot.lane.b32.xlu1 %v3751_v43, %s3523_s1 }
 0x7d7   : > { %2018 = vrot.lane.b32.xlu1 %v3751_v43, %s3524_s16 }
 0x843   : > { %v1768_v3 = vpop.xlane.xlu0 %1767 }
 0x844   : > { %v1772_v4 = vsub.f32 %v1685_v59, %v1768_v3 }
 0x846   : > { %v1774_v5 = vmul.f32 1.442695, %v1772_v4 }
 0x847   : > { %v1771_v6 = vpop.xlane.xlu1 %1770  ;;  %v1865_v7 = vpop.permute.xlu0 %1864 }
 0x848   : > { %3441 = vpow2.f32 %v1774_v5  ;;  %v1773_v8 = vsub.f32 %v1763_v0, %v1771_v6  ;;  %3248 = vmatpush3.msra.mxu1 %v1865_v7  ;;  %v3347_v0 = vpack.c.bf16 %v2305_v63, %v2304_v62  ;;  %v2554_v62 = vld [vmem:[%s3692_s20 + $0x18] sm:$0xff] }
 0x849   : > { %3257 = vmatprep.subr.mxu1 %v3513_v38 }
 0x84a   : > { %v1776_v9 = vmul.f32 1.442695, %v1773_v8 }
 0x84b   : > { %v1789_v10 = vpop.permute.xlu1 %1788 }
 0x84c   : > { %3443 = vpow2.f32 %v1776_v9  ;;  %3243 = vmatpush3.msra.mxu0 %v1789_v10 }
 0x84d   : > { %3252 = vmatprep.subr.mxu0 %v3513_v38 }
 0x84f   : > { %v1943_v19 = vpop.permute.xlu1 %1942 }
 0x852   : > { %v3442_v11 = vpop.eup %3441 }
 0x853   : > { %v1778_v12 = vsel %vm954_vm3, %v3442_v11, 0.0  ;;  %v2021_v23 = vpop.permute.xlu1 %2020 }
 0x854   : > { %1779 = vadd.xlane.f32.xlu0 %v1778_v12 }
 0x856   : > { %v3444_v13 = vpop.eup %3443 }
 0x857   : > { %v1781_v15 = vsel %vm954_vm3, %v3444_v13, 0.0  ;;  %v2019_v26 = vpop.permute.xlu1 %2018 }
 0x858   : > { %1782 = vadd.xlane.f32.xlu0 %v1781_v15 }
 0x86e   : > { %1940 = vrot.lane.b32.xlu0 %v3748_v42, %s3524_s16  ;;  %s4065_s16 = scalar_lea.vmem %s4025_s9, %s3650_s23 }
 0x8e1   : > { %v1780_v17 = vpop.xlane.xlu0 %1779 }
 0x8e2   : > { %3445 = vrcp.f32 %v1780_v17 }
 0x8e5   : > { %v1783_v18 = vpop.xlane.xlu0 %1782 }
 0x8e6   : > { %3447 = vrcp.f32 %v1783_v18 }
 0x8e9   : > { %v1941_v25 = vpop.permute.xlu0 %1940 }
 0x8ec   : > { %v3446_v20 = vpop.eup %3445 }
 0x8ed   : > { %v1786_v21 = vmul.f32 %v3446_v20, %v3442_v11 }
 0x8ef   : > { %3245 = vmatmul.mubr.msk.f32.vlgmr.msra.gmra.mrb[8].mxu0 %vm954_vm3, %v1786_v21 }
 0x8f0   : > { %v3448_v22 = vpop.eup %3447  ;;  %3253 = vmatpush3.xpose.msk.msra.mxu0 %vm954_vm3, %v1943_v19  ;;  %3254 = vmatprep.mubr.msk.f32.mxu0 %vm3514_vm2, %v3513_v38 }
 0x8f1   : > { %v1787_v24 = vmul.f32 %v3448_v22, %v3444_v13  ;;  %3262 = vmatprep.subr.mxu0 %v3513_v38 }
 0x8f3   : > { %3250 = vmatmul.mubr.msk.f32.vlgmr.msra.gmra.mrb[14].mxu1 %vm954_vm3, %v1787_v24  ;;  %3255 = vmatmul.mubr.msk.f32.vlgmr.msra.gmra.mrb[10].mxu0 %vm954_vm3, %v1941_v25 }
 0x8f4   : > { %3258 = vmatpush3.xpose.msk.msra.mxu1 %vm954_vm3, %v2021_v23  ;;  %3259 = vmatprep.mubr.msk.f32.mxu1 %vm3514_vm2, %v3513_v38 }
 0x8f5   : > { %3267 = vmatprep.subr.mxu1 %v3513_v38  ;;  %3264 = vmatprep.mubr.msk.f32.mxu0 %vm3514_vm2, %v3513_v38 }
 0x8f7   : > { %3260 = vmatmul.mubr.msk.f32.vlgmr.msra.gmra.mrb[16].mxu1 %vm954_vm3, %v2019_v26 }
 0x8f8   : > { %3269 = vmatprep.mubr.msk.f32.mxu1 %vm3514_vm2, %v3513_v38 }
 0x9c2   : > { %v1860_v27 = vpop.f32.mrb[8].mxu0 }
 0x9c3   : > { %v3246_v28 = vpop.f32.mrb[9].mxu0 }
 0x9c6   : > { %v1936_v29 = vpop.f32.mrb[14].mxu1  ;;  %v2014_v30 = vpop.f32.mrb[10].mxu0 }
 0x9c7   : > { %v2015_v31 = vadd.f32 %v3769_v46, %v2014_v30  ;;  %v3251_v32 = vpop.f32.mrb[15].mxu1  ;;  %v3256_v33 = vpop.f32.mrb[11].mxu0 }
 0x9c9   : > { %v2096_v34 = vsel %vm954_vm3, %v2015_v31, -inf }
 0x9ca   : > { %v2092_v36 = vpop.f32.mrb[16].mxu1  ;;  %2097 = vmax.xlane.f32.xlu0 %v2096_v34  ;;  %v2441_v34 = vld [vmem:[%s3682_s28] sm:$0xff] }
 0x9cb   : > { %v2093_v39 = vadd.f32 %v3775_v50, %v2092_v36  ;;  %v3261_v40 = vpop.f32.mrb[17].mxu1  ;;  %v2442_v36 = vld [vmem:[%s3682_s28 + $0x8] sm:$0xff] }
 0x9cc   : > { %v2443_v40 = vld [vmem:[%s3682_s28 + $0x10] sm:$0xff] }
 0x9cd   : > { %v2099_v41 = vsel %vm954_vm3, %v2093_v39, -inf }
 0x9ce   : > { %2100 = vmax.xlane.f32.xlu1 %v2099_v41  ;;  %v2444_v41 = vld [vmem:[%s3682_s28 + $0x18] sm:$0xff] }
 0x9df   : > { %2118 = vrot.lane.b32.xlu1 %v3748_v42, %s3525_s3 }
 0x9e3   : > { %2272 = vrot.lane.b32.xlu1 %v3840_v55, %s3526_s17 }
 0x9e7   : > { %2274 = vrot.lane.b32.xlu1 %v3842_v57, %s3526_s17 }
 0x9eb   : > { %2282 = vrot.lane.b32.xlu1 %v1936_v29, %s3527_s19 }
 0xa57   : > { %v2098_v38 = vpop.xlane.xlu0 %2097 }
 0xa58   : > { %v2102_v46 = vsub.f32 %v2015_v31, %v2098_v38  ;;  %v3355_v38 = vpack.c.bf16 %v2444_v41, %v2443_v40 }
 0xa5a   : > { %v2104_v44 = vmul.f32 1.442695, %v2102_v46 }
 0xa5b   : > { %v2101_v45 = vpop.xlane.xlu1 %2100 }
 0xa5c   : > { %3449 = vpow2.f32 %v2104_v44  ;;  %v2103_v50 = vsub.f32 %v2093_v39, %v2101_v45  ;;  %v3351_v39 = vpack.c.bf16 %v2442_v36, %v2441_v34 }
 0xa5e   : > { %v2106_v47 = vmul.f32 1.442695, %v2103_v50 }
 0xa5f   : > { %v2119_v48 = vpop.permute.xlu1 %2118 }
 0xa60   : > { %3451 = vpow2.f32 %v2106_v47  ;;  %3263 = vmatpush3.msra.mxu0 %v2119_v48 }
 0xa63   : > { %v2273_v5 = vpop.permute.xlu1 %2272 }
 0xa64   : > { %v2294_v8 = vsel %vm954_vm3, %v3806_v14, %v2273_v5  ;;  %v3085_v14 = vld [vmem:[%s4063_s4] ss:$0 sm:$0xff] }
 0xa66   : > { %v3450_v49 = vpop.eup %3449 }
 0xa67   : > { %v2108_v42 = vsel %vm954_vm3, %v3450_v49, 0.0  ;;  %v2275_v6 = vpop.permute.xlu1 %2274 }
 0xa68   : > { %2109 = vadd.xlane.f32.xlu0 %v2108_v42  ;;  %v2295_v13 = vsel %vm954_vm3, %v3808_v16, %v2275_v6  ;;  %v3088_v42 = vld [vmem:[%s4064_s30] ss:$0 sm:$0xff]  ;;  %s4069_s30 = sld [smem:[#allocation14_spill]] (!%p3098_p5) }
 0xa6a   : > { %v3452_v51 = vpop.eup %3451 }
 0xa6b   : > { %v2111_v52 = vsel %vm954_vm3, %v3452_v51, 0.0  ;;  %v2283_v9 = vpop.permute.xlu1 %2282 }
 0xa6c   : > { %2112 = vadd.xlane.f32.xlu0 %v2111_v52  ;;  %v2298_v15 = vsel %vm2296_vm5, %v2295_v13, %v2283_v9  ;;  %v3089_v52 = vld [vmem:[%s4065_s16] ss:$0 sm:$0xff] }
 0xa82   : > { %2194 = vrot.lane.b32.xlu0 %v3751_v43, %s3525_s3  ;;  %v3343_v43 = vpack.c.bf16 %v2303_v61, %v2302_v60  ;;  %v2552_v60 = vld [vmem:[%s3692_s20 + $0x8] sm:$0xff] }
 0xa84   : > { %3344 = vmatprep.subr.bf16.mxu0 %v3343_v43 }
 0xa86   : > { %2280 = vrot.lane.b32.xlu0 %v1860_v27, %s3527_s19  ;;  %s4066_s19 = scalar_lea.vmem %s4027_s11, %s3650_s23  ;;  %s4070_s23 = sld [smem:[#allocation16_spill]] (!%p3098_p5) }
 0xa87   : > { %v3090_v6 = vld [vmem:[%s4066_s19] ss:$0 sm:$0xff]  ;;  %s4068_s19 = sld [smem:[#allocation15_spill]] (!%p3098_p5) }
 0xaf5   : > { %v2110_v53 = vpop.xlane.xlu0 %2109 }
 0xaf6   : > { %3453 = vrcp.f32 %v2110_v53 }
 0xaf9   : > { %v2113_v54 = vpop.xlane.xlu0 %2112 }
 0xafa   : > { %3455 = vrcp.f32 %v2113_v54 }
 0xafd   : > { %v2195_v55 = vpop.permute.xlu0 %2194 }
 0xafe   : > { %3268 = vmatpush3.msra.mxu1 %v2195_v55 }
 0xaff   : > { %3352 = vmatprep.subr.bf16.mxu1 %v3351_v39 }
 0xb00   : > { %v3454_v56 = vpop.eup %3453 }
 0xb01   : > { %v2116_v57 = vmul.f32 %v3454_v56, %v3450_v49  ;;  %v2281_v7 = vpop.permute.xlu0 %2280 }
 0xb02   : > { %v2297_v10 = vsel %vm2296_vm5, %v2294_v8, %v2281_v7 }
 0xb03   : > { %3265 = vmatmul.mubr.msk.f32.vlgmr.msra.gmra.mrb[12].mxu0 %vm954_vm3, %v2116_v57 }
 0xb04   : > { %v3456_v58 = vpop.eup %3455  ;;  %3346 = vmatpush3.bf16.msra.mxu0 %v3343_v43  ;;  %v2553_v43 = vld [vmem:[%s3692_s20 + $0x10] sm:$0xff] }
 0xb05   : > { %v2117_v59 = vmul.f32 %v3456_v58, %v3452_v51  ;;  %3348 = vmatprep.subr.bf16.mxu0 %v3347_v0  ;;  %v3363_v63 = vpack.c.bf16 %v2554_v62, %v2553_v43 }
 0xb07   : > { %3270 = vmatmul.mubr.msk.f32.vlgmr.msra.gmra.mrb[18].mxu1 %vm954_vm3, %v2117_v59  ;;  %v2551_v59 = vld [vmem:[%s3692_s20] sm:$0xff] }
 0xb08   : > { %3350 = vmatpush3.bf16.msra.mxu0 %v3347_v0  ;;  %3354 = vmatpush3.bf16.msra.mxu1 %v3351_v39  ;;  %v3359_v61 = vpack.c.bf16 %v2552_v60, %v2551_v59  ;;  %v2555_v0 = vld [vmem:[%s3692_s20 + $0x20] sm:$0xff] }
 0xb09   : > { %3356 = vmatprep.subr.bf16.mxu1 %v3355_v38  ;;  %v3097_v59 = vld [vmem:[%s787_s18] ss:$0 sm:$0xff] }
 0xb0a   : > { %3360 = vmatprep.subr.bf16.mxu0 %v3359_v61 }
 0xb0c   : > { %3358 = vmatpush3.bf16.msra.mxu1 %v3355_v38 }
 0xbd6   : > { %v2190_v1 = vpop.f32.mrb[12].mxu0 }
 0xbd7   : > { %2288 = vrot.lane.b32.xlu0 %v2190_v1, %s3528_s25  ;;  %v3266_v2 = vpop.f32.mrb[13].mxu0  ;;  %v2556_v1 = vld [vmem:[%s3692_s20 + $0x28] sm:$0xff] }
 0xbd8   : > { %v3367_v2 = vpack.c.bf16 %v2556_v1, %v2555_v0  ;;  %v2705_v0 = vld [vmem:[%s4067_s29] sm:$0xff] (!%p3098_p5)  ;;  %v2706_v1 = vld [vmem:[%s4067_s29 + $0x8] sm:$0xff] (!%p3098_p5) }
 0xbda   : > { %v2266_v3 = vpop.f32.mrb[18].mxu1 }
 0xbdb   : > { %2290 = vrot.lane.b32.xlu1 %v2266_v3, %s3528_s25  ;;  %v3271_v4 = vpop.f32.mrb[19].mxu1  ;;  %v2557_v3 = vld [vmem:[%s3692_s20 + $0x30] sm:$0xff] }
 0xbdc   : > { %v2558_v4 = vld [vmem:[%s3692_s20 + $0x38] sm:$0xff] }
 0xbdd   : > { %v3371_v5 = vpack.c.bf16 %v2558_v4, %v2557_v3  ;;  %v3529_v3 = vmov (!%p3098_p5), 0.0|0.0   ;;  %v3376_v4 = vpack.c.bf16 (!%p3098_p5), %v2706_v1, %v2705_v0 }
 0xbde   : > { %3381 = vmatprep.subr.bf16.mxu1 (!%p3098_p5), %v3529_v3 }
 0xc49   : > { %v2289_v11 = vpop.permute.xlu0 %2288 }
 0xc4a   : > { %v2300_v12 = vsel %vm2299_vm4, %v2297_v10, %v2289_v11 }
 0xc4b   : > { %3280 = vmatprep.mubr.msk.f32.mxu0 %vm855_vm1, %v2300_v12 }
 0xc4d   : > { %v2291_v17 = vpop.permute.xlu1 %2290 }
 0xc4e   : > { %v2301_v18 = vsel %vm2299_vm4, %v2298_v15, %v2291_v17 }
 0xc4f   : > { %3281 = vmatmul.mubr.msk.f32.vlgmr.msra.gmra.mrb[14].mxu0 %vm855_vm1, %v2301_v18 }
 0xc50   : > { %3362 = vmatpush3.bf16.msra.mxu0 %v3359_v61 }
 0xc51   : > { %3364 = vmatprep.subr.bf16.mxu0 %v3363_v63 }
 0xc54   : > { %3366 = vmatpush3.bf16.msra.mxu0 %v3363_v63 }
 0xc55   : > { %3368 = vmatprep.subr.bf16.mxu0 %v3367_v2 }
 0xc58   : > { %3370 = vmatpush3.bf16.msra.mxu0 %v3367_v2  ;;  %v2707_v2 = vld [vmem:[%s4067_s29 + $0x10] sm:$0xff] (!%p3098_p5) }
 0xc59   : > { %3372 = vmatprep.subr.bf16.mxu0 %v3371_v5 }
 0xc5c   : > { %3374 = vmatpush3.bf16.msra.mxu0 %v3371_v5  ;;  %v2708_v5 = vld [vmem:[%s4067_s29 + $0x18] sm:$0xff] (!%p3098_p5) }
 0xc5d   : > { %3375 = vmatprep.subr.bf16.mxu0 (!%p3098_p5), %v3529_v3 }
 0xd22   : > { %v3282_v19 = vpop.f32.mrb[14].mxu0 }
 0xd23   : > { %v2391_v20 = vadd.f32 %v3282_v19, %v3085_v14  ;;  %v2385_v21 = vpop.f32.mrb[15].mxu0 }
 0xd24   : > { %v2386_v22 = vadd.f32 %v3085_v14, %v2385_v21 }
 0xd25   : > { %v2395_v23 = vadd.f32 %v2391_v20, %v3733_v37 }
 0xd26   : > { %v2394_v24 = vadd.f32 %v2386_v22, %v3729_v35 }
 0xd27   : > { %v2401_v16 = vsel %vm855_vm1, %v2395_v23, 0.0 }
 0xd28   : > { %2402 = vadd.xlane.f32.xlu1 %v2401_v16  ;;  %v2398_v25 = vsel %vm855_vm1, %v2394_v24, 0.0 }
 0xd29   : > { %2399 = vadd.xlane.f32.xlu0 %v2398_v25 }
 0xdb5   : > { %v2403_v26 = vpop.xlane.xlu1 %2402 }
 0xdb6   : > { %v2406_v27 = vmul.f32 0.03125, %v2403_v26  ;;  %v2400_v28 = vpop.xlane.xlu0 %2399 }
 0xdb7   : > { %v2405_v29 = vmul.f32 0.03125, %v2400_v28 }
 0xdb8   : > { %v2408_v30 = vsub.f32 %v2395_v23, %v2406_v27 }
 0xdb9   : > { %v2407_v31 = vsub.f32 %v2394_v24, %v2405_v29  ;;  %v3093_v29 = vld [vmem:[%s781_s2] ss:$0 sm:$0xff] }
 0xdba   : > { %v2410_v35 = vmul.f32 %v2408_v30, %v2408_v30 }
 0xdbb   : > { %v2409_v32 = vmul.f32 %v2407_v31, %v2407_v31 }
 0xdbc   : > { %v2414_v33 = vsel %vm855_vm1, %v2410_v35, 0.0 }
 0xdbd   : > { %v2411_v37 = vsel %vm855_vm1, %v2409_v32, 0.0 }
 0xdbe   : > { %2412 = vadd.xlane.f32.xlu0 %v2411_v37 }
 0xdc2   : > { %2415 = vadd.xlane.f32.xlu0 %v2414_v33 }
 0xe4b   : > { %v2413_v46 = vpop.xlane.xlu0 %2412 }
 0xe4c   : > { %v2417_v44 = vmul.f32 0.03125, %v2413_v46 }
 0xe4e   : > { %v2419_v45 = vadd.f32 1e-12, %v2417_v44 }
 0xe4f   : > { %v2416_v50 = vpop.xlane.xlu0 %2415 }
 0xe50   : > { %3457 = vrsqrt.f32 %v2419_v45  ;;  %v2418_v47 = vmul.f32 0.03125, %v2416_v50 }
 0xe52   : > { %v2420_v48 = vadd.f32 1e-12, %v2418_v47 }
 0xe54   : > { %3459 = vrsqrt.f32 %v2420_v48 }
 0xe5a   : > { %v3458_v49 = vpop.eup %3457 }
 0xe5b   : > { %v2423_v51 = vmul.f32 %v3458_v49, %v2407_v31 }
 0xe5d   : > { %v2431_v53 = vmul.f32 %v3088_v42, %v2423_v51 }
 0xe5e   : > { %v3460_v54 = vpop.eup %3459 }
 0xe5f   : > { %v2424_v55 = vmul.f32 %v3460_v54, %v2408_v30  ;;  %v2439_v56 = vadd.f32 %v3089_v52, %v2431_v53 }
 0xe61   : > { %v2432_v57 = vmul.f32 %v3088_v42, %v2424_v55  ;;  %3291 = vmatprep.mubr.msk.f32.mxu1 %vm855_vm1, %v2439_v56 }
 0xe63   : > { %v2440_v58 = vadd.f32 %v3089_v52, %v2432_v57 }
 0xe65   : > { %3292 = vmatmul.mubr.msk.f32.vlgmr.msra.gmra.mrb[20].mxu1 %vm855_vm1, %v2440_v58 }
 0xf38   : > { %v3293_v7 = vpop.f32.mrb[20].mxu1 }
 0xf39   : > { %v2530_v8 = vadd.f32 %v3293_v7, %v3090_v6  ;;  %v2524_v9 = vpop.f32.mrb[21].mxu1  ;;  %v3379_v7 = vpack.c.bf16 (!%p3098_p5), %v2708_v5, %v2707_v2 }
 0xf3a   : > { %v2525_v10 = vadd.f32 %v3090_v6, %v2524_v9  ;;  %v3531_v6 = vmov (!%p3098_p5), 0.0  }
 0xf3b   : > { %v2536_v11 = vmul.f32 0.044715, %v2530_v8  ;;  %v2534_v26 = vmul.f32 0.5, %v2530_v8  ;;  %3332 = vmatprep.mubr.msk.f32.mxu1 (!%p3098_p5), %vm3530_vm7, %v3531_v6 }
 0xf3c   : > { %v2535_v12 = vmul.f32 0.044715, %v2525_v10  ;;  %v2533_v16 = vmul.f32 0.5, %v2525_v10 }
 0xf3d   : > { %v2538_v13 = vmul.f32 %v2536_v11, %v2530_v8  ;;  %v2791_v11 = vld [vmem:[%s4068_s19 + $0x8] sm:$0xff] (!%p3098_p5) }
 0xf3e   : > { %v2537_v15 = vmul.f32 %v2535_v12, %v2525_v10  ;;  %v2792_v12 = vld [vmem:[%s4068_s19 + $0x10] sm:$0xff] (!%p3098_p5) }
 0xf3f   : > { %v2540_v17 = vmul.f32 %v2538_v13, %v2530_v8 }
 0xf40   : > { %v2539_v18 = vmul.f32 %v2537_v15, %v2525_v10  ;;  %v2793_v15 = vld [vmem:[%s4068_s19 + $0x18] sm:$0xff] (!%p3098_p5) }
 0xf41   : > { %v2542_v14 = vadd.f32 %v2540_v17, %v2530_v8  ;;  %v3385_v17 = vpack.c.bf16 (!%p3098_p5), %v2793_v15, %v2792_v12 }
 0xf42   : > { %v2541_v19 = vadd.f32 %v2539_v18, %v2525_v10  ;;  %v2790_v10 = vld [vmem:[%s4068_s19] sm:$0xff] (!%p3098_p5) }
 0xf43   : > { %v2544_v20 = vmul.f32 0.7978846, %v2542_v14  ;;  %v3382_v13 = vpack.c.bf16 (!%p3098_p5), %v2791_v11, %v2790_v10  ;;  %v3099_v18 = vld [vmem:[%s4069_s30] ss:$0 sm:$0xff] (!%p3098_p5) }
 0xf44   : > { %v2543_v21 = vmul.f32 0.7978846, %v2541_v19 }
 0xf45   : > { %3461 = vtanh.f32 %v2544_v20  ;;  %3383 = vmatpush3.bf16.msra.mxu1 (!%p3098_p5), %v3382_v13 }
 0xf46   : > { %3463 = vtanh.f32 %v2543_v21  ;;  %3384 = vmatprep.subr.bf16.mxu1 (!%p3098_p5), %v3529_v3 }
 0xf49   : > { %3386 = vmatpush3.bf16.msra.mxu1 (!%p3098_p5), %v3385_v17 }
 0xf4f   : > { %v3462_v22 = vpop.eup %3461 }
 0xf50   : > { %v3464_v23 = vpop.eup %3463  ;;  %v2548_v24 = vadd.f32 1.0, %v3462_v22  ;;  %v3101_v22 = vld [vmem:[%s4070_s23] ss:$0 sm:$0xff] (!%p3098_p5) }
 0xf51   : > { %v2547_v25 = vadd.f32 1.0, %v3464_v23 }
 0xf52   : > { %v2550_v28 = vmul.f32 %v2548_v24, %v2534_v26 }
 0xf53   : > { %v2549_v27 = vmul.f32 %v2547_v25, %v2533_v16 }
 0xf55   : > { %3310 = vmatprep.mubr.msk.f32.mxu0 %vm2566_vm6, %v2549_v27 }
 0xf56   : > { %3311 = vmatmul.mubr.msk.f32.vlgmr.msra.gmra.mrb[16].mxu0 %vm2566_vm6, %v2550_v28 }
 0xf57   : > { %3321 = vmatprep.mubr.msk.f32.mxu0 (!%p3098_p5), %vm3530_vm7, %v3531_v6  ;;  %3377 = vmatpush3.bf16.msra.mxu0 (!%p3098_p5), %v3376_v4 }
 0xf58   : > { %3378 = vmatprep.subr.bf16.mxu0 (!%p3098_p5), %v3529_v3 }
 0xf5b   : > { %3380 = vmatpush3.bf16.msra.mxu0 (!%p3098_p5), %v3379_v7 }
0x1029   : > { %v3312_v30 = vpop.f32.mrb[16].mxu0 }
0x102a   : > { %v2645_v31 = vadd.f32 %v3312_v30, %v3093_v29  ;;  %v2639_v32 = vpop.f32.mrb[17].mxu0 }
0x102b   : > { %v2640_v37 = vadd.f32 %v3093_v29, %v2639_v32 }
0x102c   : > { %v2649_v35 = vadd.f32 %v2645_v31, %v2440_v58 }
0x102d   : > { %v2648_v33 = vadd.f32 %v2640_v37, %v2439_v56  ;;  %v3096_v56 = vld [vmem:[%s784_s26] ss:$0 sm:$0xff] }
0x102e   : > { %v2655_v34 = vsel %vm855_vm1, %v2649_v35, 0.0 }
0x102f   : > { %2656 = vadd.xlane.f32.xlu0 %v2655_v34  ;;  %v2652_v36 = vsel %vm855_vm1, %v2648_v33, 0.0 }
0x1030   : > { %2653 = vadd.xlane.f32.xlu1 %v2652_v36 }
0x10bc   : > { %v2657_v39 = vpop.xlane.xlu0 %2656 }
0x10bd   : > { %v2659_v40 = vmul.f32 0.03125, %v2657_v39  ;;  %v2654_v41 = vpop.xlane.xlu1 %2653 }
0x10be   : > { %v2658_v38 = vmul.f32 0.03125, %v2654_v41 }
0x10bf   : > { %v2661_v46 = vsub.f32 %v2649_v35, %v2659_v40 }
0x10c0   : > { %v2660_v44 = vsub.f32 %v2648_v33, %v2658_v38 }
0x10c1   : > { %v2663_v45 = vmul.f32 %v2661_v46, %v2661_v46 }
0x10c2   : > { %v2662_v50 = vmul.f32 %v2660_v44, %v2660_v44 }
0x10c3   : > { %v2667_v47 = vsel %vm855_vm1, %v2663_v45, 0.0 }
0x10c4   : > { %2668 = vadd.xlane.f32.xlu0 %v2667_v47  ;;  %v2664_v48 = vsel %vm855_vm1, %v2662_v50, 0.0 }
0x10c5   : > { %2665 = vadd.xlane.f32.xlu1 %v2664_v48 }
0x1151   : > { %v2669_v49 = vpop.xlane.xlu0 %2668 }
0x1152   : > { %v2671_v42 = vmul.f32 0.03125, %v2669_v49  ;;  %v2666_v51 = vpop.xlane.xlu1 %2665 }
0x1153   : > { %v2670_v52 = vmul.f32 0.03125, %v2666_v51 }
0x1154   : > { %v2673_v53 = vadd.f32 1e-12, %v2671_v42 }
0x1155   : > { %v2672_v54 = vadd.f32 1e-12, %v2670_v52 }
0x1156   : > { %3465 = vrsqrt.f32 %v2673_v53 }
0x1157   : > { %3467 = vrsqrt.f32 %v2672_v54 }
0x1160   : > { %v3466_v55 = vpop.eup %3465 }
0x1161   : > { %v3468_v57 = vpop.eup %3467  ;;  %v2677_v58 = vmul.f32 %v3466_v55, %v2661_v46 }
0x1162   : > { %v2676_v60 = vmul.f32 %v3468_v57, %v2660_v44  ;;  %2699 = sbr.rel (%p3098_p5) target bundleno = 5212 (0x145c), region = 108 }
0x1163   : > { %v2685_v61 = vmul.f32 %v3096_v56, %v2677_v58 }
0x1164   : > { %v2684_v43 = vmul.f32 %v3096_v56, %v2676_v60 }
0x1165   : > { %v2693_v62 = vadd.f32 %v3097_v59, %v2685_v61 }
0x1166   : > { %v2692_v63 = vadd.f32 %v3097_v59, %v2684_v43 }
0x1167   : > { %2695 = vst.msk [vmem:[#allocation2 + $0x8] sm:$0xff] %vm855_vm1, %v2693_v62  ;;  %v2701_v8 = vrot.slane (!%p3098_p5), %v2693_v62, 7 }
0x1168   : > { %2694 = vst.msk [vmem:[#allocation2] sm:$0xff] %vm855_vm1, %v2692_v63 }
0x1169   : > { %v2704_v9 = vsel %vm2703_vm8, %v2692_v63, %v2701_v8 }
0x116a   : > { %3322 = vmatmul.mubr.msk.f32.vlgmr.msra.gmra.mrb[0].mxu0 %vm855_vm1, %v2704_v9 }
0x123d   : > { %v2785_v14 = vpop.f32.mrb[0].mxu0 }
0x123e   : > { %v2786_v19 = vadd.f32 %v3099_v18, %v2785_v14  ;;  %v3323_v20 = vpop.f32.mrb[1].mxu0 }
0x1240   : > { %3469 = vtanh.f32 %v2786_v19 }
0x124a   : > { %v3470_v21 = vpop.eup %3469 }
0x124b   : > { %3333 = vmatmul.mubr.msk.f32.vlgmr.msra.gmra.mrb[0].mxu1 %vm855_vm1, %v3470_v21 }
0x131e   : > { %v2870_v23 = vpop.f32.mrb[0].mxu1 }
0x131f   : > { %v2871_v24 = vadd.f32 %v3101_v22, %v2870_v23  ;;  %v3334_v16 = vpop.f32.mrb[1].mxu1 }
0x1321   : > { %v2875_v25 = vsel %vm2874_vm9, %v2871_v24, -inf }
0x1322   : > { %2876 = vmax.xlane.f32.xlu0 %v2875_v25 }
0x13af   : > { %v2877_v26 = vpop.xlane.xlu0 %2876 }
0x13b0   : > { %v2878_v27 = vsub.f32 %v2871_v24, %v2877_v26 }
0x13b2   : > { %v2879_v28 = vmul.f32 1.442695, %v2878_v27 }
0x13b4   : > { %3471 = vpow2.f32 %v2879_v28 }
0x13be   : > { %v3472_v29 = vpop.eup %3471 }
0x13bf   : > { %v2881_v30 = vsel %vm2874_vm9, %v3472_v29, 0.0 }
0x13c0   : > { %2882 = vadd.xlane.f32.xlu0 %v2881_v30 }
0x144d   : > { %v2883_v31 = vpop.xlane.xlu0 %2882 }
0x144e   : > { %3473 = vrcp.f32 %v2883_v31 }
0x1458   : > { %v3474_v32 = vpop.eup %3473 }
0x1459   : > { %v2885_v37 = vmul.f32 %v3474_v32, %v3472_v29 }
0x145b   : > { %2886 = vst [vmem:[#allocation3] sm:$0x3] %v2885_v37 }
0x145c PF: > { %p3391_p6 = scmp.eq.s32.totalorder %s3644_s22, 1  ;;  %s3532_s1 = smov [#allocation3]  }
0x145d   : > { %s2894_s16 = sshll.u32 %s3532_s1, 4  ;;  %s2895_s16 = int_to_ptr.vmem [resolvable:$true] %s2894_s16 }
0x145e   : > { %s3475_s3 = scalar_lea.vmem %s2895_s16, 32  ;;  %p3482_p10 = scmp.lt.s32.totalorder %s2895_s16, %s2895_s16 }
0x145f   : > { %p3476_p7 = scmp.ne.s32.totalorder %s2895_s16, %s3475_s3  ;;  %p3483_p11 = scmp.lt.s32.totalorder %s3475_s3, %s3475_s3 }
0x1461   : > { %p3477_p8 = pnand %p3476_p7, %p3391_p6  ;;  %p3484_p12 = por %p3483_p11, %p3482_p10 }
0x1463   : > { %p3478_p9 = pneg %p3477_p8 }
0x1465   : > { %p3485_p13 = pnand %p3484_p12, %p3478_p9 }
0x1467   : > { %3488 = shalt.err (!%p3485_p13)
}
0x1468   : > { %s4071_s25 = sld [smem:[#allocation17_spill]] }
0x146e   : > { %s3489_s2 = scalar_lea.hbm %s4071_s25, 32 }
0x146f   : > { %p3490_p0 = scmp.ne.s32.totalorder %s4071_s25, %s3489_s2  ;;  %p3495_p3 = scmp.lt.u32.totalorder %s3489_s2, %s4071_s25 }
0x1471   : > { %p3491_p1 = pnand %p3490_p0, %p3391_p6 }
0x1473   : > { %p3492_p2 = pneg %p3491_p1 }
0x1475   : > { %p3497_p4 = pnand %p3495_p3, %p3492_p2 }
0x1477   : > { %3500 = shalt.err (!%p3497_p4)
}
0x1478   : > { %3388 = dma.vmem_to_hbm [thread:$0]  (%p3391_p6), %s2895_s16, 32, %s4071_s25, [#allocation4]  }
0x1479   : > { %3506 = dma.done.wait (%p3391_p6), [#allocation4], 32  }
0x147a   : > { %3508 = vsyncadd (%p3391_p6), [#allocation4], 4294967264 }
0x147b PF: > { %s4072_s28 = sld [smem:[#allocation6_spill]] }
0x1481   : > { %s31_s1 = sadd.s32 1, %s4072_s28  }
0x1482   : > { %p28_p5 = scmp.ge.s32.totalorder %s31_s1, 4  }
0x1484   :  { %30 = sbr.rel (!%p28_p5) target bundleno = 13 (0xd), region = 168 }
0x148b   :  { %2907 = vsyncpa [#allocation4], 1 }
0x148c   :  { %2909 = vsyncpa [#allocation4 + $0x1], 1 }

</bundles_post_ra>
